<compile_context>
chip_gen: v6e
topology: v6e:2x2x1
jax: 0.10.0
libtpu: 0.0.40
codegen_flags: <defaults>
</compile_context>

<pallas_src>
import jax
import jax.numpy as jnp
from jax.experimental import pallas as pl
from jax.experimental.pallas import tpu as pltpu

# ------------------------- model hyper-parameters ---------------------------
B = 2                       # batch
C_IN = 3                    # input channels (RGB)
H = W = 16                  # input spatial size
PATCH = 4                   # patch-embed kernel/stride
HP = H // PATCH             # 4
WP = W // PATCH             # 4
N_TOKENS = HP * WP          # 16 tokens per image
BT = B * N_TOKENS           # 32 tokens total (batch flattened into token axis)
PATCH_DIM = C_IN * PATCH * PATCH   # 48
EMBED = 32                  # embed dim
NUM_HEADS = 2
HEAD_DIM = EMBED // NUM_HEADS      # 16
WIN = 2                     # window size (2x2 windows over the 4x4 token grid)
T_WIN = WIN * WIN           # 4 tokens per window
MLP_HIDDEN = 2 * EMBED      # 64 (zero-padded to 128 lanes inside the kernel)
NUM_KPTS = 17               # COCO keypoints
LANE = 128                  # lane-dense width
SCALE = 1.0 / (HEAD_DIM ** 0.5)

# ----------------------- weight-slab row offsets (bf16) ---------------------
# All offsets / row counts are multiples of 16 -> every slab read is (16,128)-tile aligned.
WR_PE = 0
WR_QKV = WR_PE + PATCH_DIM          # 48
WR_PROJ = WR_QKV + EMBED            # 80
WR_FC1 = WR_PROJ + EMBED            # 112
WR_FC2 = WR_FC1 + EMBED             # 144  (hidden padded to 128 rows)
WR_HQKV = WR_FC2 + LANE             # 272
WR_HPROJ = WR_HQKV + EMBED          # 304
WR_HFC1 = WR_HPROJ + EMBED          # 336
WR_HFC2 = WR_HFC1 + EMBED           # 368
WR_KPT = WR_HFC2 + LANE             # 496
W_ROWS = WR_KPT + EMBED             # 528

# ----------------------- vector-slab row offsets (f32) ----------------------
VR_POS = 0                          # (BT, EMBED)  pos-embed, tiled over batch
VR_BBIAS = VR_POS + BT              # 32   (NUM_HEADS*BT, BT) backbone window+image bias
VR_HBIAS = VR_BBIAS + NUM_HEADS * BT  # 96 (BT, BT) head-encoder image-block mask
VR_VEC0 = VR_HBIAS + BT             # 128  single-row vectors start here
(VB_PE_B, VB_LN1_G, VB_LN1_B, VB_QKV_B, VB_PROJ_B, VB_LN2_G, VB_LN2_B, VB_FC1_B,
 VB_FC2_B, VB_LNF_G, VB_LNF_B, VB_HLN1_G, VB_HLN1_B, VB_HQKV_B, VB_HPROJ_B,
 VB_HLN2_G, VB_HLN2_B, VB_HFC1_B, VB_HFC2_B, VB_HLNF_G, VB_HLNF_B, VB_KPT_B,
 ) = range(VR_VEC0, VR_VEC0 + 22)
V_ROWS = ((VR_VEC0 + 22 + 7) // 8) * 8   # 152


# ------------------------------ fused kernel --------------------------------
def _fused_kernel(patches_ref, w_ref, v_ref, out_ref):
    bf16 = jnp.bfloat16
    f32 = jnp.float32

    def w_at(r0, rows):
        return w_ref[r0:r0 + rows, :]                      # (rows, 128) bf16, tile-aligned

    def vrow(r, n=EMBED):
        return v_ref[r:r + 1, :n]                          # (1, n) f32

    def vmat(r0):
        return v_ref[r0:r0 + BT, :BT]                      # (BT, BT) f32

    def ln(x, g_row, b_row):
        mu = jnp.mean(x, axis=-1, keepdims=True)
        var = jnp.mean(jnp.square(x - mu), axis=-1, keepdims=True)
        return (x - mu) * jax.lax.rsqrt(var + 1e-5) * vrow(g_row) + vrow(b_row)

    def mha(xn, wr_qkv, vb_qkv, wr_proj, vb_proj, bias_rows):
        # fused QKV: one (BT, D) @ (D, 128) lane-dense matmul (softmax scale pre-folded
        # into the Q weight columns).
        qkv = jnp.dot(xn.astype(bf16), w_at(wr_qkv, EMBED),
                      preferred_element_type=f32) + vrow(vb_qkv, LANE)
        qkv = qkv.astype(bf16)                             # single cast for q/k/v
        head_outs = []
        for h in range(NUM_HEADS):                         # unrolled (2 heads)
            q = qkv[:, h * HEAD_DIM:(h + 1) * HEAD_DIM]
            k = qkv[:, EMBED + h * HEAD_DIM:EMBED + (h + 1) * HEAD_DIM]
            vh = qkv[:, 2 * EMBED + h * HEAD_DIM:2 * EMBED + (h + 1) * HEAD_DIM]
            s = jax.lax.dot_general(q, k, (((1,), (1,)), ((), ())),
                                    preferred_element_type=f32)          # (BT, BT)
            s = s + vmat(bias_rows[h])                     # window / image mask + rel bias
            s = s - jnp.max(s, axis=-1, keepdims=True)
            p = jnp.exp(s)
            p = p * pl.reciprocal(jnp.sum(p, axis=-1, keepdims=True), approx=True)
            head_outs.append(jnp.dot(p.astype(bf16), vh, preferred_element_type=f32))
        o = jnp.concatenate(head_outs, axis=-1).astype(bf16)              # (BT, EMBED)
        o = jnp.dot(o, w_at(wr_proj, EMBED),
                    preferred_element_type=f32)[:, :EMBED] + vrow(vb_proj)
        return o

    def mlp(xn, wr1, vb1, wr2, vb2):
        h = jnp.dot(xn.astype(bf16), w_at(wr1, EMBED),
                    preferred_element_type=f32) + vrow(vb1, LANE)         # (BT, 128)
        h = jax.nn.gelu(h, approximate=True)
        return jnp.dot(h.astype(bf16), w_at(wr2, LANE),
                       preferred_element_type=f32)[:, :EMBED] + vrow(vb2)

    # -------------------- backbone: patch embed --------------------
    tok = jnp.dot(patches_ref[...], w_at(WR_PE, PATCH_DIM),
                  preferred_element_type=f32)[:, :EMBED] + vrow(VB_PE_B)  # (BT, D) f32

    # -------------------- backbone: window-MSA Swin block --------------------
    xn = ln(tok, VB_LN1_G, VB_LN1_B)
    tok = tok + mha(xn, WR_QKV, VB_QKV_B, WR_PROJ, VB_PROJ_B,
                    (VR_BBIAS, VR_BBIAS + BT))
    xn = ln(tok, VB_LN2_G, VB_LN2_B)
    tok = tok + mlp(xn, WR_FC1, VB_FC1_B, WR_FC2, VB_FC2_B)
    feat = ln(tok, VB_LNF_G, VB_LNF_B)

    # -------------------- keypoint head (PoseTransformer) --------------------
    tok = feat + v_ref[VR_POS:VR_POS + BT, :EMBED]
    xn = ln(tok, VB_HLN1_G, VB_HLN1_B)
    tok = tok + mha(xn, WR_HQKV, VB_HQKV_B, WR_HPROJ, VB_HPROJ_B,
                    (VR_HBIAS, VR_HBIAS))
    xn = ln(tok, VB_HLN2_G, VB_HLN2_B)
    tok = tok + mlp(xn, WR_HFC1, VB_HFC1_B, WR_HFC2, VB_HFC2_B)
    tok = ln(tok, VB_HLNF_G, VB_HLNF_B)

    kpt = jnp.dot(tok.astype(bf16), w_at(WR_KPT, EMBED),
                  preferred_element_type=f32) + vrow(VB_KPT_B, LANE)      # (BT, 128)
    out_ref[...] = kpt                                                    # lane-dense store


# --------------------------- parameter construction -------------------------
def init_params(key):
    keys = jax.random.split(key, 16)

    def nrm(k, shape):
        return (0.02 * jax.random.normal(k, shape)).astype(jnp.float32)

    ones = lambda n: jnp.ones((n,), jnp.float32)
    zeros = lambda n: jnp.zeros((n,), jnp.float32)

    P = {}
    # backbone: patch embed (Conv2d C_IN->EMBED, k=4, s=4 as a matmul)
    P["pe_w"] = nrm(keys[0], (PATCH_DIM, EMBED))
    P["pe_b"] = zeros(EMBED)
    # backbone: one Swin (window-MSA) block
    P["ln1_g"], P["ln1_b"] = ones(EMBED), zeros(EMBED)
    P["qkv_w"] = nrm(keys[1], (EMBED, 3 * EMBED))
    P["qkv_b"] = zeros(3 * EMBED)
    P["rel_bias"] = nrm(keys[2], (NUM_HEADS, T_WIN, T_WIN))
    P["proj_w"] = nrm(keys[3], (EMBED, EMBED))
    P["proj_b"] = zeros(EMBED)
    P["ln2_g"], P["ln2_b"] = ones(EMBED), zeros(EMBED)
    P["fc1_w"] = nrm(keys[4], (EMBED, MLP_HIDDEN))
    P["fc1_b"] = zeros(MLP_HIDDEN)
    P["fc2_w"] = nrm(keys[5], (MLP_HIDDEN, EMBED))
    P["fc2_b"] = zeros(EMBED)
    P["lnf_g"], P["lnf_b"] = ones(EMBED), zeros(EMBED)
    # keypoint head: PoseTransformer (pos-embed + 1 encoder layer + kpt linear)
    P["pos_emb"] = nrm(keys[6], (N_TOKENS, EMBED))
    P["h_ln1_g"], P["h_ln1_b"] = ones(EMBED), zeros(EMBED)
    P["h_qkv_w"] = nrm(keys[7], (EMBED, 3 * EMBED))
    P["h_qkv_b"] = zeros(3 * EMBED)
    P["h_proj_w"] = nrm(keys[8], (EMBED, EMBED))
    P["h_proj_b"] = zeros(EMBED)
    P["h_ln2_g"], P["h_ln2_b"] = ones(EMBED), zeros(EMBED)
    P["h_fc1_w"] = nrm(keys[9], (EMBED, MLP_HIDDEN))
    P["h_fc1_b"] = zeros(MLP_HIDDEN)
    P["h_fc2_w"] = nrm(keys[10], (MLP_HIDDEN, EMBED))
    P["h_fc2_b"] = zeros(EMBED)
    P["h_lnf_g"], P["h_lnf_b"] = ones(EMBED), zeros(EMBED)
    P["kpt_w"] = nrm(keys[11], (EMBED, NUM_KPTS))
    P["kpt_b"] = zeros(NUM_KPTS)
    return P


# ------------------------ one-time parameter packing -------------------------
def _padc(a, width=LANE):
    """Zero-pad the last (lane) dim of a 1-D or 2-D f32 array to `width`."""
    a = jnp.asarray(a, jnp.float32)
    if a.ndim == 1:
        a = a.reshape(1, -1)
    r, c = a.shape
    return jnp.zeros((r, width), jnp.float32).at[:, :c].set(a)


def _backbone_attn_bias(rel_bias):
    """Window partitioning + relative-position bias + cross-image mask, as (H, BT, BT)."""
    t = jnp.arange(N_TOKENS)
    r, c = t // WP, t % WP
    wid = (r // WIN) * (WP // WIN) + (c // WIN)          # window id per token
    lid = (r % WIN) * WIN + (c % WIN)                    # local index within window
    wid_b = jnp.tile(wid, (B,))
    lid_b = jnp.tile(lid, (B,))
    img = jnp.repeat(jnp.arange(B), N_TOKENS)
    valid = (img[:, None] == img[None, :]) & (wid_b[:, None] == wid_b[None, :])
    rel = rel_bias[:, lid_b[:, None], lid_b[None, :]]    # (H, BT, BT)
    return jnp.where(valid[None], rel, -1e9).astype(jnp.float32)


def _head_attn_bias():
    """Block-diagonal image mask (BT, BT) for the keypoint-head encoder."""
    img = jnp.repeat(jnp.arange(B), N_TOKENS)
    return jnp.where(img[:, None] == img[None, :], 0.0, -1e9).astype(jnp.float32)


def prepare_params(P):
    """One-time repack of all parameters into two VMEM-friendly slabs (hoisted out of fwd)."""
    def fold_scale(qkv_w, qkv_b):
        # fold the softmax 1/sqrt(hd) scale into the Q columns / bias
        return (qkv_w.at[:, :EMBED].multiply(SCALE),
                qkv_b.at[:EMBED].multiply(SCALE))

    qkv_w, qkv_b = fold_scale(P["qkv_w"], P["qkv_b"])
    h_qkv_w, h_qkv_b = fold_scale(P["h_qkv_w"], P["h_qkv_b"])

    def pad_fc2(w):  # (MLP_HIDDEN, EMBED) -> (128, EMBED), zero rows beyond hidden
        return jnp.zeros((LANE, EMBED), jnp.float32).at[:MLP_HIDDEN, :].set(w)

    wslab = jnp.concatenate([
        _padc(P["pe_w"]),            # rows   0..47
        _padc(qkv_w),                # rows  48..79
        _padc(P["proj_w"]),          # rows  80..111
        _padc(P["fc1_w"]),           # rows 112..143
        _padc(pad_fc2(P["fc2_w"])),  # rows 144..271
        _padc(h_qkv_w),              # rows 272..303
        _padc(P["h_proj_w"]),        # rows 304..335
        _padc(P["h_fc1_w"]),         # rows 336..367
        _padc(pad_fc2(P["h_fc2_w"])),  # rows 368..495
        _padc(P["kpt_w"]),           # rows 496..527
    ], axis=0).astype(jnp.bfloat16)
    assert wslab.shape == (W_ROWS, LANE), wslab.shape

    bbias = _backbone_attn_bias(P["rel_bias"]).reshape(NUM_HEADS * BT, BT)
    vec_rows = [
        _padc(jnp.tile(P["pos_emb"], (B, 1))),   # rows 0..31
        _padc(bbias),                            # rows 32..95
        _padc(_head_attn_bias()),                # rows 96..127
        _padc(P["pe_b"]),
        _padc(P["ln1_g"]), _padc(P["ln1_b"]),
        _padc(qkv_b),
        _padc(P["proj_b"]),
        _padc(P["ln2_g"]), _padc(P["ln2_b"]),
        _padc(P["fc1_b"]), _padc(P["fc2_b"]),
        _padc(P["lnf_g"]), _padc(P["lnf_b"]),
        _padc(P["h_ln1_g"]), _padc(P["h_ln1_b"]),
        _padc(h_qkv_b),
        _padc(P["h_proj_b"]),
        _padc(P["h_ln2_g"]), _padc(P["h_ln2_b"]),
        _padc(P["h_fc1_b"]), _padc(P["h_fc2_b"]),
        _padc(P["h_lnf_g"]), _padc(P["h_lnf_b"]),
        _padc(P["kpt_b"]),
    ]
    vslab = jnp.concatenate(vec_rows, axis=0)
    vslab = jnp.pad(vslab, ((0, V_ROWS - vslab.shape[0]), (0, 0)))
    assert vslab.shape == (V_ROWS, LANE), vslab.shape

    return {"wslab": wslab, "vslab": vslab}


# ------------------------------- forward pass -------------------------------
def swin_pose_forward(prep, x):
    """x: NCHW (B, C_IN, H, W) float32 -> heatmaps (B, NUM_KPTS, H/4, W/4)."""
    # patch extraction (depends on x, so per-call; everything else was packed once)
    patches = x.reshape(B, C_IN, HP, PATCH, WP, PATCH)
    patches = patches.transpose(0, 2, 4, 1, 3, 5).reshape(BT, PATCH_DIM)
    patches = patches.astype(jnp.bfloat16)

    out = pl.pallas_call(
        _fused_kernel,
        out_shape=jax.ShapeDtypeStruct((BT, LANE), jnp.float32),
        in_specs=[
            pl.BlockSpec(memory_space=pltpu.MemorySpace.VMEM),   # patches (32, 48) bf16
            pl.BlockSpec(memory_space=pltpu.MemorySpace.VMEM),   # weight slab (528,128) bf16
            pl.BlockSpec(memory_space=pltpu.MemorySpace.VMEM),   # vector slab (152,128) f32
        ],
        out_specs=pl.BlockSpec(memory_space=pltpu.MemorySpace.VMEM),
    )(patches, prep["wslab"], prep["vslab"])

    kpt = out.reshape(B, N_TOKENS, LANE)[:, :, :NUM_KPTS]        # (B, T, K)
    return kpt.transpose(0, 2, 1).reshape(B, NUM_KPTS, HP, WP)   # NCHW heatmaps


# ----------------------------------- main ------------------------------------
if __name__ == "__main__":
    key = jax.random.PRNGKey(0)
    k_param, k_input = jax.random.split(key)
    params = init_params(k_param)
    prep = prepare_params(params)            # one-time repack, outside the hot path
    x = jax.random.normal(k_input, (B, C_IN, H, W), dtype=jnp.float32)

    fwd = jax.jit(swin_pose_forward)
    out = jax.block_until_ready(fwd(prep, x))

    assert out.shape == (B, NUM_KPTS, HP, WP), out.shape
    assert jnp.all(jnp.isfinite(out))
    print("KERNEL_OK")
</pallas_src>

<mosaic_0001>
module attributes {stable_mosaic.version = 11 : i64} {
  func.func @_fused_kernel(%arg0: memref<32x48xbf16, #tpu.memory_space<vmem>>, %arg1: memref<528x128xbf16, #tpu.memory_space<vmem>>, %arg2: memref<152x128xf32, #tpu.memory_space<vmem>>, %arg3: memref<32x128xf32, #tpu.memory_space<vmem>>) attributes {dimension_semantics = [], scalar_prefetch = 0 : i64, scratch_operands = 0 : i64, tpu.core_type = #tpu.core_type<tc>} {
    %c0 = arith.constant 0 : index
    %c0_0 = arith.constant 0 : index
    %0 = vector.load %arg0[%c0, %c0_0] : memref<32x48xbf16, #tpu.memory_space<vmem>>, vector<32x48xbf16>
    %c0_1 = arith.constant 0 : index
    %c0_2 = arith.constant 0 : index
    %1 = vector.load %arg1[%c0_1, %c0_2] : memref<528x128xbf16, #tpu.memory_space<vmem>>, vector<48x128xbf16>
    %cst = arith.constant dense<0.000000e+00> : vector<32x128xf32>
    %2 = tpu.matmul %0, %1, %cst {dimension_numbers = #tpu.dot_dimension_numbers<[1], [0], [0], [1], [0, 0, 1, 1], [], []>} : vector<32x48xbf16>, vector<48x128xbf16>, vector<32x128xf32> -> vector<32x128xf32>
    %3 = vector.extract_strided_slice %2 {offsets = [0, 0], sizes = [32, 32], strides = [1, 1]} : vector<32x128xf32> to vector<32x32xf32>
    %c128 = arith.constant 128 : index
    %c0_3 = arith.constant 0 : index
    %4 = vector.load %arg2[%c128, %c0_3] : memref<152x128xf32, #tpu.memory_space<vmem>>, vector<1x32xf32>
    %5 = vector.broadcast %4 : vector<1x32xf32> to vector<32x32xf32>
    %6 = arith.addf %3, %5 : vector<32x32xf32>
    %cst_4 = arith.constant dense<0.000000e+00> : vector<32xf32>
    %7 = vector.multi_reduction <add>, %6, %cst_4 [1] : vector<32x32xf32> to vector<32xf32>
    %8 = vector.shape_cast %7 : vector<32xf32> to vector<32x1xf32>
    %cst_5 = arith.constant 3.200000e+01 : f32
    %9 = vector.broadcast %cst_5 : f32 to vector<32x1xf32>
    %10 = arith.divf %8, %9 : vector<32x1xf32>
    %11 = vector.broadcast %10 : vector<32x1xf32> to vector<32x32xf32>
    %12 = arith.subf %6, %11 : vector<32x32xf32>
    %13 = arith.mulf %12, %12 : vector<32x32xf32>
    %cst_6 = arith.constant dense<0.000000e+00> : vector<32xf32>
    %14 = vector.multi_reduction <add>, %13, %cst_6 [1] : vector<32x32xf32> to vector<32xf32>
    %15 = vector.shape_cast %14 : vector<32xf32> to vector<32x1xf32>
    %cst_7 = arith.constant 3.200000e+01 : f32
    %16 = vector.broadcast %cst_7 : f32 to vector<32x1xf32>
    %17 = arith.divf %15, %16 : vector<32x1xf32>
    %18 = vector.broadcast %10 : vector<32x1xf32> to vector<32x32xf32>
    %19 = arith.subf %6, %18 : vector<32x32xf32>
    %cst_8 = arith.constant 9.99999974E-6 : f32
    %20 = vector.broadcast %cst_8 : f32 to vector<32x1xf32>
    %21 = arith.addf %17, %20 : vector<32x1xf32>
    %22 = math.rsqrt %21 : vector<32x1xf32>
    %23 = vector.broadcast %22 : vector<32x1xf32> to vector<32x32xf32>
    %24 = arith.mulf %19, %23 : vector<32x32xf32>
    %c129 = arith.constant 129 : index
    %c0_9 = arith.constant 0 : index
    %25 = vector.load %arg2[%c129, %c0_9] : memref<152x128xf32, #tpu.memory_space<vmem>>, vector<1x32xf32>
    %26 = vector.broadcast %25 : vector<1x32xf32> to vector<32x32xf32>
    %27 = arith.mulf %24, %26 : vector<32x32xf32>
    %c130 = arith.constant 130 : index
    %c0_10 = arith.constant 0 : index
    %28 = vector.load %arg2[%c130, %c0_10] : memref<152x128xf32, #tpu.memory_space<vmem>>, vector<1x32xf32>
    %29 = vector.broadcast %28 : vector<1x32xf32> to vector<32x32xf32>
    %30 = arith.addf %27, %29 : vector<32x32xf32>
    %31 = arith.truncf %30 : vector<32x32xf32> to vector<32x32xbf16>
    %c48 = arith.constant 48 : index
    %c0_11 = arith.constant 0 : index
    %32 = vector.load %arg1[%c48, %c0_11] : memref<528x128xbf16, #tpu.memory_space<vmem>>, vector<32x128xbf16>
    %cst_12 = arith.constant dense<0.000000e+00> : vector<32x128xf32>
    %33 = tpu.matmul %31, %32, %cst_12 {dimension_numbers = #tpu.dot_dimension_numbers<[1], [0], [0], [1], [0, 0, 1, 1], [], []>} : vector<32x32xbf16>, vector<32x128xbf16>, vector<32x128xf32> -> vector<32x128xf32>
    %c131 = arith.constant 131 : index
    %c0_13 = arith.constant 0 : index
    %34 = vector.load %arg2[%c131, %c0_13] : memref<152x128xf32, #tpu.memory_space<vmem>>, vector<1x128xf32>
    %35 = vector.broadcast %34 : vector<1x128xf32> to vector<32x128xf32>
    %36 = arith.addf %33, %35 : vector<32x128xf32>
    %37 = arith.truncf %36 : vector<32x128xf32> to vector<32x128xbf16>
    %38 = vector.extract_strided_slice %37 {offsets = [0, 0], sizes = [32, 16], strides = [1, 1]} : vector<32x128xbf16> to vector<32x16xbf16>
    %39 = vector.extract_strided_slice %37 {offsets = [0, 32], sizes = [32, 16], strides = [1, 1]} : vector<32x128xbf16> to vector<32x16xbf16>
    %40 = vector.extract_strided_slice %37 {offsets = [0, 64], sizes = [32, 16], strides = [1, 1]} : vector<32x128xbf16> to vector<32x16xbf16>
    %cst_14 = arith.constant dense<0.000000e+00> : vector<32x32xf32>
    %41 = tpu.matmul %38, %39, %cst_14 {dimension_numbers = #tpu.dot_dimension_numbers<[1], [1], [0], [0], [0, 0, 1, 0], [], []>} : vector<32x16xbf16>, vector<32x16xbf16>, vector<32x32xf32> -> vector<32x32xf32>
    %c32 = arith.constant 32 : index
    %c0_15 = arith.constant 0 : index
    %42 = vector.load %arg2[%c32, %c0_15] : memref<152x128xf32, #tpu.memory_space<vmem>>, vector<32x32xf32>
    %43 = arith.addf %41, %42 : vector<32x32xf32>
    %cst_16 = arith.constant dense<0xFF800000> : vector<32xf32>
    %44 = vector.multi_reduction <maximumf>, %43, %cst_16 [1] : vector<32x32xf32> to vector<32xf32>
    %45 = vector.shape_cast %44 : vector<32xf32> to vector<32x1xf32>
    %46 = vector.broadcast %45 : vector<32x1xf32> to vector<32x32xf32>
    %47 = arith.subf %43, %46 : vector<32x32xf32>
    %48 = math.exp %47 : vector<32x32xf32>
    %cst_17 = arith.constant dense<0.000000e+00> : vector<32xf32>
    %49 = vector.multi_reduction <add>, %48, %cst_17 [1] : vector<32x32xf32> to vector<32xf32>
    %50 = vector.shape_cast %49 : vector<32xf32> to vector<32x1xf32>
    %51 = tpu.reciprocal %50 {approx = true} : vector<32x1xf32> -> vector<32x1xf32>
    %52 = vector.broadcast %51 : vector<32x1xf32> to vector<32x32xf32>
    %53 = arith.mulf %48, %52 : vector<32x32xf32>
    %54 = arith.truncf %53 : vector<32x32xf32> to vector<32x32xbf16>
    %cst_18 = arith.constant dense<0.000000e+00> : vector<32x16xf32>
    %55 = tpu.matmul %54, %40, %cst_18 {dimension_numbers = #tpu.dot_dimension_numbers<[1], [0], [0], [1], [0, 0, 1, 1], [], []>} : vector<32x32xbf16>, vector<32x16xbf16>, vector<32x16xf32> -> vector<32x16xf32>
    %56 = vector.extract_strided_slice %37 {offsets = [0, 16], sizes = [32, 16], strides = [1, 1]} : vector<32x128xbf16> to vector<32x16xbf16>
    %57 = vector.extract_strided_slice %37 {offsets = [0, 48], sizes = [32, 16], strides = [1, 1]} : vector<32x128xbf16> to vector<32x16xbf16>
    %58 = vector.extract_strided_slice %37 {offsets = [0, 80], sizes = [32, 16], strides = [1, 1]} : vector<32x128xbf16> to vector<32x16xbf16>
    %cst_19 = arith.constant dense<0.000000e+00> : vector<32x32xf32>
    %59 = tpu.matmul %56, %57, %cst_19 {dimension_numbers = #tpu.dot_dimension_numbers<[1], [1], [0], [0], [0, 0, 1, 0], [], []>} : vector<32x16xbf16>, vector<32x16xbf16>, vector<32x32xf32> -> vector<32x32xf32>
    %c64 = arith.constant 64 : index
    %c0_20 = arith.constant 0 : index
    %60 = vector.load %arg2[%c64, %c0_20] : memref<152x128xf32, #tpu.memory_space<vmem>>, vector<32x32xf32>
    %61 = arith.addf %59, %60 : vector<32x32xf32>
    %cst_21 = arith.constant dense<0xFF800000> : vector<32xf32>
    %62 = vector.multi_reduction <maximumf>, %61, %cst_21 [1] : vector<32x32xf32> to vector<32xf32>
    %63 = vector.shape_cast %62 : vector<32xf32> to vector<32x1xf32>
    %64 = vector.broadcast %63 : vector<32x1xf32> to vector<32x32xf32>
    %65 = arith.subf %61, %64 : vector<32x32xf32>
    %66 = math.exp %65 : vector<32x32xf32>
    %cst_22 = arith.constant dense<0.000000e+00> : vector<32xf32>
    %67 = vector.multi_reduction <add>, %66, %cst_22 [1] : vector<32x32xf32> to vector<32xf32>
    %68 = vector.shape_cast %67 : vector<32xf32> to vector<32x1xf32>
    %69 = tpu.reciprocal %68 {approx = true} : vector<32x1xf32> -> vector<32x1xf32>
    %70 = vector.broadcast %69 : vector<32x1xf32> to vector<32x32xf32>
    %71 = arith.mulf %66, %70 : vector<32x32xf32>
    %72 = arith.truncf %71 : vector<32x32xf32> to vector<32x32xbf16>
    %cst_23 = arith.constant dense<0.000000e+00> : vector<32x16xf32>
    %73 = tpu.matmul %72, %58, %cst_23 {dimension_numbers = #tpu.dot_dimension_numbers<[1], [0], [0], [1], [0, 0, 1, 1], [], []>} : vector<32x32xbf16>, vector<32x16xbf16>, vector<32x16xf32> -> vector<32x16xf32>
    %74 = tpu.concatenate %55, %73 in 1 : vector<32x16xf32>, vector<32x16xf32> -> vector<32x32xf32>
    %75 = arith.truncf %74 : vector<32x32xf32> to vector<32x32xbf16>
    %c80 = arith.constant 80 : index
    %c0_24 = arith.constant 0 : index
    %76 = vector.load %arg1[%c80, %c0_24] : memref<528x128xbf16, #tpu.memory_space<vmem>>, vector<32x128xbf16>
    %cst_25 = arith.constant dense<0.000000e+00> : vector<32x128xf32>
    %77 = tpu.matmul %75, %76, %cst_25 {dimension_numbers = #tpu.dot_dimension_numbers<[1], [0], [0], [1], [0, 0, 1, 1], [], []>} : vector<32x32xbf16>, vector<32x128xbf16>, vector<32x128xf32> -> vector<32x128xf32>
    %78 = vector.extract_strided_slice %77 {offsets = [0, 0], sizes = [32, 32], strides = [1, 1]} : vector<32x128xf32> to vector<32x32xf32>
    %c132 = arith.constant 132 : index
    %c0_26 = arith.constant 0 : index
    %79 = vector.load %arg2[%c132, %c0_26] : memref<152x128xf32, #tpu.memory_space<vmem>>, vector<1x32xf32>
    %80 = vector.broadcast %79 : vector<1x32xf32> to vector<32x32xf32>
    %81 = arith.addf %78, %80 : vector<32x32xf32>
    %82 = arith.addf %6, %81 : vector<32x32xf32>
    %cst_27 = arith.constant dense<0.000000e+00> : vector<32xf32>
    %83 = vector.multi_reduction <add>, %82, %cst_27 [1] : vector<32x32xf32> to vector<32xf32>
    %84 = vector.shape_cast %83 : vector<32xf32> to vector<32x1xf32>
    %cst_28 = arith.constant 3.200000e+01 : f32
    %85 = vector.broadcast %cst_28 : f32 to vector<32x1xf32>
    %86 = arith.divf %84, %85 : vector<32x1xf32>
    %87 = vector.broadcast %86 : vector<32x1xf32> to vector<32x32xf32>
    %88 = arith.subf %82, %87 : vector<32x32xf32>
    %89 = arith.mulf %88, %88 : vector<32x32xf32>
    %cst_29 = arith.constant dense<0.000000e+00> : vector<32xf32>
    %90 = vector.multi_reduction <add>, %89, %cst_29 [1] : vector<32x32xf32> to vector<32xf32>
    %91 = vector.shape_cast %90 : vector<32xf32> to vector<32x1xf32>
    %cst_30 = arith.constant 3.200000e+01 : f32
    %92 = vector.broadcast %cst_30 : f32 to vector<32x1xf32>
    %93 = arith.divf %91, %92 : vector<32x1xf32>
    %94 = vector.broadcast %86 : vector<32x1xf32> to vector<32x32xf32>
    %95 = arith.subf %82, %94 : vector<32x32xf32>
    %cst_31 = arith.constant 9.99999974E-6 : f32
    %96 = vector.broadcast %cst_31 : f32 to vector<32x1xf32>
    %97 = arith.addf %93, %96 : vector<32x1xf32>
    %98 = math.rsqrt %97 : vector<32x1xf32>
    %99 = vector.broadcast %98 : vector<32x1xf32> to vector<32x32xf32>
    %100 = arith.mulf %95, %99 : vector<32x32xf32>
    %c133 = arith.constant 133 : index
    %c0_32 = arith.constant 0 : index
    %101 = vector.load %arg2[%c133, %c0_32] : memref<152x128xf32, #tpu.memory_space<vmem>>, vector<1x32xf32>
    %102 = vector.broadcast %101 : vector<1x32xf32> to vector<32x32xf32>
    %103 = arith.mulf %100, %102 : vector<32x32xf32>
    %c134 = arith.constant 134 : index
    %c0_33 = arith.constant 0 : index
    %104 = vector.load %arg2[%c134, %c0_33] : memref<152x128xf32, #tpu.memory_space<vmem>>, vector<1x32xf32>
    %105 = vector.broadcast %104 : vector<1x32xf32> to vector<32x32xf32>
    %106 = arith.addf %103, %105 : vector<32x32xf32>
    %107 = arith.truncf %106 : vector<32x32xf32> to vector<32x32xbf16>
    %c112 = arith.constant 112 : index
    %c0_34 = arith.constant 0 : index
    %108 = vector.load %arg1[%c112, %c0_34] : memref<528x128xbf16, #tpu.memory_space<vmem>>, vector<32x128xbf16>
    %cst_35 = arith.constant dense<0.000000e+00> : vector<32x128xf32>
    %109 = tpu.matmul %107, %108, %cst_35 {dimension_numbers = #tpu.dot_dimension_numbers<[1], [0], [0], [1], [0, 0, 1, 1], [], []>} : vector<32x32xbf16>, vector<32x128xbf16>, vector<32x128xf32> -> vector<32x128xf32>
    %c135 = arith.constant 135 : index
    %c0_36 = arith.constant 0 : index
    %110 = vector.load %arg2[%c135, %c0_36] : memref<152x128xf32, #tpu.memory_space<vmem>>, vector<1x128xf32>
    %111 = vector.broadcast %110 : vector<1x128xf32> to vector<32x128xf32>
    %112 = arith.addf %109, %111 : vector<32x128xf32>
    %113 = arith.mulf %112, %112 : vector<32x128xf32>
    %114 = arith.mulf %112, %113 : vector<32x128xf32>
    %cst_37 = arith.constant 4.471500e-02 : f32
    %115 = vector.broadcast %cst_37 : f32 to vector<32x128xf32>
    %116 = arith.mulf %115, %114 : vector<32x128xf32>
    %117 = arith.addf %112, %116 : vector<32x128xf32>
    %cst_38 = arith.constant 0.797884583 : f32
    %118 = vector.broadcast %cst_38 : f32 to vector<32x128xf32>
    %119 = arith.mulf %118, %117 : vector<32x128xf32>
    %120 = math.tanh %119 : vector<32x128xf32>
    %cst_39 = arith.constant 1.000000e+00 : f32
    %121 = vector.broadcast %cst_39 : f32 to vector<32x128xf32>
    %122 = arith.addf %121, %120 : vector<32x128xf32>
    %cst_40 = arith.constant 5.000000e-01 : f32
    %123 = vector.broadcast %cst_40 : f32 to vector<32x128xf32>
    %124 = arith.mulf %123, %122 : vector<32x128xf32>
    %125 = arith.mulf %112, %124 : vector<32x128xf32>
    %126 = arith.truncf %125 : vector<32x128xf32> to vector<32x128xbf16>
    %c144 = arith.constant 144 : index
    %c0_41 = arith.constant 0 : index
    %127 = vector.load %arg1[%c144, %c0_41] : memref<528x128xbf16, #tpu.memory_space<vmem>>, vector<128x128xbf16>
    %cst_42 = arith.constant dense<0.000000e+00> : vector<32x128xf32>
    %128 = tpu.matmul %126, %127, %cst_42 {dimension_numbers = #tpu.dot_dimension_numbers<[1], [0], [0], [1], [0, 0, 1, 1], [], []>} : vector<32x128xbf16>, vector<128x128xbf16>, vector<32x128xf32> -> vector<32x128xf32>
    %129 = vector.extract_strided_slice %128 {offsets = [0, 0], sizes = [32, 32], strides = [1, 1]} : vector<32x128xf32> to vector<32x32xf32>
    %c136 = arith.constant 136 : index
    %c0_43 = arith.constant 0 : index
    %130 = vector.load %arg2[%c136, %c0_43] : memref<152x128xf32, #tpu.memory_space<vmem>>, vector<1x32xf32>
    %131 = vector.broadcast %130 : vector<1x32xf32> to vector<32x32xf32>
    %132 = arith.addf %129, %131 : vector<32x32xf32>
    %133 = arith.addf %82, %132 : vector<32x32xf32>
    %cst_44 = arith.constant dense<0.000000e+00> : vector<32xf32>
    %134 = vector.multi_reduction <add>, %133, %cst_44 [1] : vector<32x32xf32> to vector<32xf32>
    %135 = vector.shape_cast %134 : vector<32xf32> to vector<32x1xf32>
    %cst_45 = arith.constant 3.200000e+01 : f32
    %136 = vector.broadcast %cst_45 : f32 to vector<32x1xf32>
    %137 = arith.divf %135, %136 : vector<32x1xf32>
    %138 = vector.broadcast %137 : vector<32x1xf32> to vector<32x32xf32>
    %139 = arith.subf %133, %138 : vector<32x32xf32>
    %140 = arith.mulf %139, %139 : vector<32x32xf32>
    %cst_46 = arith.constant dense<0.000000e+00> : vector<32xf32>
    %141 = vector.multi_reduction <add>, %140, %cst_46 [1] : vector<32x32xf32> to vector<32xf32>
    %142 = vector.shape_cast %141 : vector<32xf32> to vector<32x1xf32>
    %cst_47 = arith.constant 3.200000e+01 : f32
    %143 = vector.broadcast %cst_47 : f32 to vector<32x1xf32>
    %144 = arith.divf %142, %143 : vector<32x1xf32>
    %145 = vector.broadcast %137 : vector<32x1xf32> to vector<32x32xf32>
    %146 = arith.subf %133, %145 : vector<32x32xf32>
    %cst_48 = arith.constant 9.99999974E-6 : f32
    %147 = vector.broadcast %cst_48 : f32 to vector<32x1xf32>
    %148 = arith.addf %144, %147 : vector<32x1xf32>
    %149 = math.rsqrt %148 : vector<32x1xf32>
    %150 = vector.broadcast %149 : vector<32x1xf32> to vector<32x32xf32>
    %151 = arith.mulf %146, %150 : vector<32x32xf32>
    %c137 = arith.constant 137 : index
    %c0_49 = arith.constant 0 : index
    %152 = vector.load %arg2[%c137, %c0_49] : memref<152x128xf32, #tpu.memory_space<vmem>>, vector<1x32xf32>
    %153 = vector.broadcast %152 : vector<1x32xf32> to vector<32x32xf32>
    %154 = arith.mulf %151, %153 : vector<32x32xf32>
    %c138 = arith.constant 138 : index
    %c0_50 = arith.constant 0 : index
    %155 = vector.load %arg2[%c138, %c0_50] : memref<152x128xf32, #tpu.memory_space<vmem>>, vector<1x32xf32>
    %156 = vector.broadcast %155 : vector<1x32xf32> to vector<32x32xf32>
    %157 = arith.addf %154, %156 : vector<32x32xf32>
    %c0_51 = arith.constant 0 : index
    %c0_52 = arith.constant 0 : index
    %158 = vector.load %arg2[%c0_51, %c0_52] : memref<152x128xf32, #tpu.memory_space<vmem>>, vector<32x32xf32>
    %159 = arith.addf %157, %158 : vector<32x32xf32>
    %cst_53 = arith.constant dense<0.000000e+00> : vector<32xf32>
    %160 = vector.multi_reduction <add>, %159, %cst_53 [1] : vector<32x32xf32> to vector<32xf32>
    %161 = vector.shape_cast %160 : vector<32xf32> to vector<32x1xf32>
    %cst_54 = arith.constant 3.200000e+01 : f32
    %162 = vector.broadcast %cst_54 : f32 to vector<32x1xf32>
    %163 = arith.divf %161, %162 : vector<32x1xf32>
    %164 = vector.broadcast %163 : vector<32x1xf32> to vector<32x32xf32>
    %165 = arith.subf %159, %164 : vector<32x32xf32>
    %166 = arith.mulf %165, %165 : vector<32x32xf32>
    %cst_55 = arith.constant dense<0.000000e+00> : vector<32xf32>
    %167 = vector.multi_reduction <add>, %166, %cst_55 [1] : vector<32x32xf32> to vector<32xf32>
    %168 = vector.shape_cast %167 : vector<32xf32> to vector<32x1xf32>
    %cst_56 = arith.constant 3.200000e+01 : f32
    %169 = vector.broadcast %cst_56 : f32 to vector<32x1xf32>
    %170 = arith.divf %168, %169 : vector<32x1xf32>
    %171 = vector.broadcast %163 : vector<32x1xf32> to vector<32x32xf32>
    %172 = arith.subf %159, %171 : vector<32x32xf32>
    %cst_57 = arith.constant 9.99999974E-6 : f32
    %173 = vector.broadcast %cst_57 : f32 to vector<32x1xf32>
    %174 = arith.addf %170, %173 : vector<32x1xf32>
    %175 = math.rsqrt %174 : vector<32x1xf32>
    %176 = vector.broadcast %175 : vector<32x1xf32> to vector<32x32xf32>
    %177 = arith.mulf %172, %176 : vector<32x32xf32>
    %c139 = arith.constant 139 : index
    %c0_58 = arith.constant 0 : index
    %178 = vector.load %arg2[%c139, %c0_58] : memref<152x128xf32, #tpu.memory_space<vmem>>, vector<1x32xf32>
    %179 = vector.broadcast %178 : vector<1x32xf32> to vector<32x32xf32>
    %180 = arith.mulf %177, %179 : vector<32x32xf32>
    %c140 = arith.constant 140 : index
    %c0_59 = arith.constant 0 : index
    %181 = vector.load %arg2[%c140, %c0_59] : memref<152x128xf32, #tpu.memory_space<vmem>>, vector<1x32xf32>
    %182 = vector.broadcast %181 : vector<1x32xf32> to vector<32x32xf32>
    %183 = arith.addf %180, %182 : vector<32x32xf32>
    %184 = arith.truncf %183 : vector<32x32xf32> to vector<32x32xbf16>
    %c272 = arith.constant 272 : index
    %c0_60 = arith.constant 0 : index
    %185 = vector.load %arg1[%c272, %c0_60] : memref<528x128xbf16, #tpu.memory_space<vmem>>, vector<32x128xbf16>
    %cst_61 = arith.constant dense<0.000000e+00> : vector<32x128xf32>
    %186 = tpu.matmul %184, %185, %cst_61 {dimension_numbers = #tpu.dot_dimension_numbers<[1], [0], [0], [1], [0, 0, 1, 1], [], []>} : vector<32x32xbf16>, vector<32x128xbf16>, vector<32x128xf32> -> vector<32x128xf32>
    %c141 = arith.constant 141 : index
    %c0_62 = arith.constant 0 : index
    %187 = vector.load %arg2[%c141, %c0_62] : memref<152x128xf32, #tpu.memory_space<vmem>>, vector<1x128xf32>
    %188 = vector.broadcast %187 : vector<1x128xf32> to vector<32x128xf32>
    %189 = arith.addf %186, %188 : vector<32x128xf32>
    %190 = arith.truncf %189 : vector<32x128xf32> to vector<32x128xbf16>
    %191 = vector.extract_strided_slice %190 {offsets = [0, 0], sizes = [32, 16], strides = [1, 1]} : vector<32x128xbf16> to vector<32x16xbf16>
    %192 = vector.extract_strided_slice %190 {offsets = [0, 32], sizes = [32, 16], strides = [1, 1]} : vector<32x128xbf16> to vector<32x16xbf16>
    %193 = vector.extract_strided_slice %190 {offsets = [0, 64], sizes = [32, 16], strides = [1, 1]} : vector<32x128xbf16> to vector<32x16xbf16>
    %cst_63 = arith.constant dense<0.000000e+00> : vector<32x32xf32>
    %194 = tpu.matmul %191, %192, %cst_63 {dimension_numbers = #tpu.dot_dimension_numbers<[1], [1], [0], [0], [0, 0, 1, 0], [], []>} : vector<32x16xbf16>, vector<32x16xbf16>, vector<32x32xf32> -> vector<32x32xf32>
    %c96 = arith.constant 96 : index
    %c0_64 = arith.constant 0 : index
    %195 = vector.load %arg2[%c96, %c0_64] : memref<152x128xf32, #tpu.memory_space<vmem>>, vector<32x32xf32>
    %196 = arith.addf %194, %195 : vector<32x32xf32>
    %cst_65 = arith.constant dense<0xFF800000> : vector<32xf32>
    %197 = vector.multi_reduction <maximumf>, %196, %cst_65 [1] : vector<32x32xf32> to vector<32xf32>
    %198 = vector.shape_cast %197 : vector<32xf32> to vector<32x1xf32>
    %199 = vector.broadcast %198 : vector<32x1xf32> to vector<32x32xf32>
    %200 = arith.subf %196, %199 : vector<32x32xf32>
    %201 = math.exp %200 : vector<32x32xf32>
    %cst_66 = arith.constant dense<0.000000e+00> : vector<32xf32>
    %202 = vector.multi_reduction <add>, %201, %cst_66 [1] : vector<32x32xf32> to vector<32xf32>
    %203 = vector.shape_cast %202 : vector<32xf32> to vector<32x1xf32>
    %204 = tpu.reciprocal %203 {approx = true} : vector<32x1xf32> -> vector<32x1xf32>
    %205 = vector.broadcast %204 : vector<32x1xf32> to vector<32x32xf32>
    %206 = arith.mulf %201, %205 : vector<32x32xf32>
    %207 = arith.truncf %206 : vector<32x32xf32> to vector<32x32xbf16>
    %cst_67 = arith.constant dense<0.000000e+00> : vector<32x16xf32>
    %208 = tpu.matmul %207, %193, %cst_67 {dimension_numbers = #tpu.dot_dimension_numbers<[1], [0], [0], [1], [0, 0, 1, 1], [], []>} : vector<32x32xbf16>, vector<32x16xbf16>, vector<32x16xf32> -> vector<32x16xf32>
    %209 = vector.extract_strided_slice %190 {offsets = [0, 16], sizes = [32, 16], strides = [1, 1]} : vector<32x128xbf16> to vector<32x16xbf16>
    %210 = vector.extract_strided_slice %190 {offsets = [0, 48], sizes = [32, 16], strides = [1, 1]} : vector<32x128xbf16> to vector<32x16xbf16>
    %211 = vector.extract_strided_slice %190 {offsets = [0, 80], sizes = [32, 16], strides = [1, 1]} : vector<32x128xbf16> to vector<32x16xbf16>
    %cst_68 = arith.constant dense<0.000000e+00> : vector<32x32xf32>
    %212 = tpu.matmul %209, %210, %cst_68 {dimension_numbers = #tpu.dot_dimension_numbers<[1], [1], [0], [0], [0, 0, 1, 0], [], []>} : vector<32x16xbf16>, vector<32x16xbf16>, vector<32x32xf32> -> vector<32x32xf32>
    %c96_69 = arith.constant 96 : index
    %c0_70 = arith.constant 0 : index
    %213 = vector.load %arg2[%c96_69, %c0_70] : memref<152x128xf32, #tpu.memory_space<vmem>>, vector<32x32xf32>
    %214 = arith.addf %212, %213 : vector<32x32xf32>
    %cst_71 = arith.constant dense<0xFF800000> : vector<32xf32>
    %215 = vector.multi_reduction <maximumf>, %214, %cst_71 [1] : vector<32x32xf32> to vector<32xf32>
    %216 = vector.shape_cast %215 : vector<32xf32> to vector<32x1xf32>
    %217 = vector.broadcast %216 : vector<32x1xf32> to vector<32x32xf32>
    %218 = arith.subf %214, %217 : vector<32x32xf32>
    %219 = math.exp %218 : vector<32x32xf32>
    %cst_72 = arith.constant dense<0.000000e+00> : vector<32xf32>
    %220 = vector.multi_reduction <add>, %219, %cst_72 [1] : vector<32x32xf32> to vector<32xf32>
    %221 = vector.shape_cast %220 : vector<32xf32> to vector<32x1xf32>
    %222 = tpu.reciprocal %221 {approx = true} : vector<32x1xf32> -> vector<32x1xf32>
    %223 = vector.broadcast %222 : vector<32x1xf32> to vector<32x32xf32>
    %224 = arith.mulf %219, %223 : vector<32x32xf32>
    %225 = arith.truncf %224 : vector<32x32xf32> to vector<32x32xbf16>
    %cst_73 = arith.constant dense<0.000000e+00> : vector<32x16xf32>
    %226 = tpu.matmul %225, %211, %cst_73 {dimension_numbers = #tpu.dot_dimension_numbers<[1], [0], [0], [1], [0, 0, 1, 1], [], []>} : vector<32x32xbf16>, vector<32x16xbf16>, vector<32x16xf32> -> vector<32x16xf32>
    %227 = tpu.concatenate %208, %226 in 1 : vector<32x16xf32>, vector<32x16xf32> -> vector<32x32xf32>
    %228 = arith.truncf %227 : vector<32x32xf32> to vector<32x32xbf16>
    %c304 = arith.constant 304 : index
    %c0_74 = arith.constant 0 : index
    %229 = vector.load %arg1[%c304, %c0_74] : memref<528x128xbf16, #tpu.memory_space<vmem>>, vector<32x128xbf16>
    %cst_75 = arith.constant dense<0.000000e+00> : vector<32x128xf32>
    %230 = tpu.matmul %228, %229, %cst_75 {dimension_numbers = #tpu.dot_dimension_numbers<[1], [0], [0], [1], [0, 0, 1, 1], [], []>} : vector<32x32xbf16>, vector<32x128xbf16>, vector<32x128xf32> -> vector<32x128xf32>
    %231 = vector.extract_strided_slice %230 {offsets = [0, 0], sizes = [32, 32], strides = [1, 1]} : vector<32x128xf32> to vector<32x32xf32>
    %c142 = arith.constant 142 : index
    %c0_76 = arith.constant 0 : index
    %232 = vector.load %arg2[%c142, %c0_76] : memref<152x128xf32, #tpu.memory_space<vmem>>, vector<1x32xf32>
    %233 = vector.broadcast %232 : vector<1x32xf32> to vector<32x32xf32>
    %234 = arith.addf %231, %233 : vector<32x32xf32>
    %235 = arith.addf %159, %234 : vector<32x32xf32>
    %cst_77 = arith.constant dense<0.000000e+00> : vector<32xf32>
    %236 = vector.multi_reduction <add>, %235, %cst_77 [1] : vector<32x32xf32> to vector<32xf32>
    %237 = vector.shape_cast %236 : vector<32xf32> to vector<32x1xf32>
    %cst_78 = arith.constant 3.200000e+01 : f32
    %238 = vector.broadcast %cst_78 : f32 to vector<32x1xf32>
    %239 = arith.divf %237, %238 : vector<32x1xf32>
    %240 = vector.broadcast %239 : vector<32x1xf32> to vector<32x32xf32>
    %241 = arith.subf %235, %240 : vector<32x32xf32>
    %242 = arith.mulf %241, %241 : vector<32x32xf32>
    %cst_79 = arith.constant dense<0.000000e+00> : vector<32xf32>
    %243 = vector.multi_reduction <add>, %242, %cst_79 [1] : vector<32x32xf32> to vector<32xf32>
    %244 = vector.shape_cast %243 : vector<32xf32> to vector<32x1xf32>
    %cst_80 = arith.constant 3.200000e+01 : f32
    %245 = vector.broadcast %cst_80 : f32 to vector<32x1xf32>
    %246 = arith.divf %244, %245 : vector<32x1xf32>
    %247 = vector.broadcast %239 : vector<32x1xf32> to vector<32x32xf32>
    %248 = arith.subf %235, %247 : vector<32x32xf32>
    %cst_81 = arith.constant 9.99999974E-6 : f32
    %249 = vector.broadcast %cst_81 : f32 to vector<32x1xf32>
    %250 = arith.addf %246, %249 : vector<32x1xf32>
    %251 = math.rsqrt %250 : vector<32x1xf32>
    %252 = vector.broadcast %251 : vector<32x1xf32> to vector<32x32xf32>
    %253 = arith.mulf %248, %252 : vector<32x32xf32>
    %c143 = arith.constant 143 : index
    %c0_82 = arith.constant 0 : index
    %254 = vector.load %arg2[%c143, %c0_82] : memref<152x128xf32, #tpu.memory_space<vmem>>, vector<1x32xf32>
    %255 = vector.broadcast %254 : vector<1x32xf32> to vector<32x32xf32>
    %256 = arith.mulf %253, %255 : vector<32x32xf32>
    %c144_83 = arith.constant 144 : index
    %c0_84 = arith.constant 0 : index
    %257 = vector.load %arg2[%c144_83, %c0_84] : memref<152x128xf32, #tpu.memory_space<vmem>>, vector<1x32xf32>
    %258 = vector.broadcast %257 : vector<1x32xf32> to vector<32x32xf32>
    %259 = arith.addf %256, %258 : vector<32x32xf32>
    %260 = arith.truncf %259 : vector<32x32xf32> to vector<32x32xbf16>
    %c336 = arith.constant 336 : index
    %c0_85 = arith.constant 0 : index
    %261 = vector.load %arg1[%c336, %c0_85] : memref<528x128xbf16, #tpu.memory_space<vmem>>, vector<32x128xbf16>
    %cst_86 = arith.constant dense<0.000000e+00> : vector<32x128xf32>
    %262 = tpu.matmul %260, %261, %cst_86 {dimension_numbers = #tpu.dot_dimension_numbers<[1], [0], [0], [1], [0, 0, 1, 1], [], []>} : vector<32x32xbf16>, vector<32x128xbf16>, vector<32x128xf32> -> vector<32x128xf32>
    %c145 = arith.constant 145 : index
    %c0_87 = arith.constant 0 : index
    %263 = vector.load %arg2[%c145, %c0_87] : memref<152x128xf32, #tpu.memory_space<vmem>>, vector<1x128xf32>
    %264 = vector.broadcast %263 : vector<1x128xf32> to vector<32x128xf32>
    %265 = arith.addf %262, %264 : vector<32x128xf32>
    %266 = arith.mulf %265, %265 : vector<32x128xf32>
    %267 = arith.mulf %265, %266 : vector<32x128xf32>
    %cst_88 = arith.constant 4.471500e-02 : f32
    %268 = vector.broadcast %cst_88 : f32 to vector<32x128xf32>
    %269 = arith.mulf %268, %267 : vector<32x128xf32>
    %270 = arith.addf %265, %269 : vector<32x128xf32>
    %cst_89 = arith.constant 0.797884583 : f32
    %271 = vector.broadcast %cst_89 : f32 to vector<32x128xf32>
    %272 = arith.mulf %271, %270 : vector<32x128xf32>
    %273 = math.tanh %272 : vector<32x128xf32>
    %cst_90 = arith.constant 1.000000e+00 : f32
    %274 = vector.broadcast %cst_90 : f32 to vector<32x128xf32>
    %275 = arith.addf %274, %273 : vector<32x128xf32>
    %cst_91 = arith.constant 5.000000e-01 : f32
    %276 = vector.broadcast %cst_91 : f32 to vector<32x128xf32>
    %277 = arith.mulf %276, %275 : vector<32x128xf32>
    %278 = arith.mulf %265, %277 : vector<32x128xf32>
    %279 = arith.truncf %278 : vector<32x128xf32> to vector<32x128xbf16>
    %c368 = arith.constant 368 : index
    %c0_92 = arith.constant 0 : index
    %280 = vector.load %arg1[%c368, %c0_92] : memref<528x128xbf16, #tpu.memory_space<vmem>>, vector<128x128xbf16>
    %cst_93 = arith.constant dense<0.000000e+00> : vector<32x128xf32>
    %281 = tpu.matmul %279, %280, %cst_93 {dimension_numbers = #tpu.dot_dimension_numbers<[1], [0], [0], [1], [0, 0, 1, 1], [], []>} : vector<32x128xbf16>, vector<128x128xbf16>, vector<32x128xf32> -> vector<32x128xf32>
    %282 = vector.extract_strided_slice %281 {offsets = [0, 0], sizes = [32, 32], strides = [1, 1]} : vector<32x128xf32> to vector<32x32xf32>
    %c146 = arith.constant 146 : index
    %c0_94 = arith.constant 0 : index
    %283 = vector.load %arg2[%c146, %c0_94] : memref<152x128xf32, #tpu.memory_space<vmem>>, vector<1x32xf32>
    %284 = vector.broadcast %283 : vector<1x32xf32> to vector<32x32xf32>
    %285 = arith.addf %282, %284 : vector<32x32xf32>
    %286 = arith.addf %235, %285 : vector<32x32xf32>
    %cst_95 = arith.constant dense<0.000000e+00> : vector<32xf32>
    %287 = vector.multi_reduction <add>, %286, %cst_95 [1] : vector<32x32xf32> to vector<32xf32>
    %288 = vector.shape_cast %287 : vector<32xf32> to vector<32x1xf32>
    %cst_96 = arith.constant 3.200000e+01 : f32
    %289 = vector.broadcast %cst_96 : f32 to vector<32x1xf32>
    %290 = arith.divf %288, %289 : vector<32x1xf32>
    %291 = vector.broadcast %290 : vector<32x1xf32> to vector<32x32xf32>
    %292 = arith.subf %286, %291 : vector<32x32xf32>
    %293 = arith.mulf %292, %292 : vector<32x32xf32>
    %cst_97 = arith.constant dense<0.000000e+00> : vector<32xf32>
    %294 = vector.multi_reduction <add>, %293, %cst_97 [1] : vector<32x32xf32> to vector<32xf32>
    %295 = vector.shape_cast %294 : vector<32xf32> to vector<32x1xf32>
    %cst_98 = arith.constant 3.200000e+01 : f32
    %296 = vector.broadcast %cst_98 : f32 to vector<32x1xf32>
    %297 = arith.divf %295, %296 : vector<32x1xf32>
    %298 = vector.broadcast %290 : vector<32x1xf32> to vector<32x32xf32>
    %299 = arith.subf %286, %298 : vector<32x32xf32>
    %cst_99 = arith.constant 9.99999974E-6 : f32
    %300 = vector.broadcast %cst_99 : f32 to vector<32x1xf32>
    %301 = arith.addf %297, %300 : vector<32x1xf32>
    %302 = math.rsqrt %301 : vector<32x1xf32>
    %303 = vector.broadcast %302 : vector<32x1xf32> to vector<32x32xf32>
    %304 = arith.mulf %299, %303 : vector<32x32xf32>
    %c147 = arith.constant 147 : index
    %c0_100 = arith.constant 0 : index
    %305 = vector.load %arg2[%c147, %c0_100] : memref<152x128xf32, #tpu.memory_space<vmem>>, vector<1x32xf32>
    %306 = vector.broadcast %305 : vector<1x32xf32> to vector<32x32xf32>
    %307 = arith.mulf %304, %306 : vector<32x32xf32>
    %c148 = arith.constant 148 : index
    %c0_101 = arith.constant 0 : index
    %308 = vector.load %arg2[%c148, %c0_101] : memref<152x128xf32, #tpu.memory_space<vmem>>, vector<1x32xf32>
    %309 = vector.broadcast %308 : vector<1x32xf32> to vector<32x32xf32>
    %310 = arith.addf %307, %309 : vector<32x32xf32>
    %311 = arith.truncf %310 : vector<32x32xf32> to vector<32x32xbf16>
    %c496 = arith.constant 496 : index
    %c0_102 = arith.constant 0 : index
    %312 = vector.load %arg1[%c496, %c0_102] : memref<528x128xbf16, #tpu.memory_space<vmem>>, vector<32x128xbf16>
    %cst_103 = arith.constant dense<0.000000e+00> : vector<32x128xf32>
    %313 = tpu.matmul %311, %312, %cst_103 {dimension_numbers = #tpu.dot_dimension_numbers<[1], [0], [0], [1], [0, 0, 1, 1], [], []>} : vector<32x32xbf16>, vector<32x128xbf16>, vector<32x128xf32> -> vector<32x128xf32>
    %c149 = arith.constant 149 : index
    %c0_104 = arith.constant 0 : index
    %314 = vector.load %arg2[%c149, %c0_104] : memref<152x128xf32, #tpu.memory_space<vmem>>, vector<1x128xf32>
    %315 = vector.broadcast %314 : vector<1x128xf32> to vector<32x128xf32>
    %316 = arith.addf %313, %315 : vector<32x128xf32>
    %c0_105 = arith.constant 0 : index
    %c0_106 = arith.constant 0 : index
    %317 = vector.load %arg3[%c0_105, %c0_106] : memref<32x128xf32, #tpu.memory_space<vmem>>, vector<32x128xf32>
    tpu.vector_store %arg3[%c0_105, %c0_106], %316 {strides = array<i32>} : memref<32x128xf32, #tpu.memory_space<vmem>>, vector<32x128xf32>,
    return
  }
}

</mosaic_0001>

<bundles_post_ra>
// kernel: swin_pose_forward.1
= control target key start
LH: loop header
LB: loop body
LE: loop exit
PB: predicated region body
PF: predicated region fallthrough
CT: control target
= control target key end

     0   :  { %vm54_vm0 = vcmask 392192   ;;  %s3323_s0 = inlined_call_operand.vmem [shape: bf16[32,48], index: 0, kind: input, shape index: {}]   ;;  %s3324_s1 = inlined_call_operand.vmem [shape: bf16[528,128], index: 1, kind: input, shape index: {}]   ;;  %s3325_s2 = inlined_call_operand.vmem [shape: f32[152,128], index: 2, kind: input, shape index: {}]   ;;  %s3326_s3 = inlined_call_operand.hbm [shape: f32[32,128], index: 3, kind: output, shape index: {}]  }
   0x1   :  { %v2597_v0 = vld [vmem:[%s3324_s1 + $0x10] sm:$0xff]   ;;  %v2598_v1 = vld [vmem:[%s3324_s1 + $0x8] sm:$0xff]   ;;  %v2600_v2 = vld [vmem:[%s3323_s0] sm:$0xff]  }
   0x2   :  { %2390 = vmatprep.subr.bf16.mxu1 %v2597_v0  ;;  %v2599_v3 = vld [vmem:[%s3324_s1] sm:$0xff]   ;;  %2396 = vmatprep.mubr.msk.bf16.mxu1 %vm54_vm0, %v2600_v2  ;;  %v2601_v4 = vld [vmem:[%s3323_s0 + $0x8] sm:$0xff]  }
   0x3   :  { %2391 = vmatpush3.bf16.msra.mxu1 %v2597_v0 }
   0x4   :  { %2392 = vmatprep.subr.bf16.mxu1 %v2598_v1 }
   0x7   :  { %2393 = vmatpush3.bf16.msra.mxu1 %v2598_v1 }
   0x8   :  { %2394 = vmatprep.subr.bf16.mxu1 %v2599_v3 }
   0xb   :  { %2395 = vmatpush3.bf16.msra.mxu1 %v2599_v3 }
   0xe   :  { %2397 = vmatmul.mubr.msk.bf16.vlgmr.msra.gmra.mxu1 %vm54_vm0, %v2601_v4 }
   0xf   :  { %8 = vsyncpa [#allocation3], 0  ;;  %v2223_v5 = vld [vmem:[%s3325_s2 + $0x80] ss:$0 sm:$0xff]  ;;  %vm119_vm1 = vcmask 261120   ;;  %v2603_v39 = vld [vmem:[%s3324_s1 + $0x18] sm:$0xff]  }
  0x10   :  { %v2602_v38 = vld [vmem:[%s3324_s1 + $0x20] sm:$0xff]   ;;  %vm281_vm2 = vcmask 130048   ;;  %s2782_s6 = smov 96   ;;  %s2783_s15 = smov 64  }
  0x11   :  { %2400 = vmatprep.subr.bf16.mxu1 %v2602_v38  ;;  %v2224_v54 = vld [vmem:[%s3325_s2 + $0x81] ss:$0 sm:$0xff]  ;;  %v2225_v60 = vld [vmem:[%s3325_s2 + $0x82] ss:$0 sm:$0xff]  ;;  %s2784_s16 = smov 80   ;;  %s2785_s17 = smov 112  }
  0x12   :  { %2401 = vmatpush3.bf16.msra.mxu1 %v2602_v38  ;;  %s2786_s25 = smov 48   ;;  %s2787_s30 = smov 16  }
  0x13   :  { %2402 = vmatprep.subr.bf16.mxu1 %v2603_v39  ;;  %s2788_s8 = smov [#allocation2]  }
  0x14   :  { %s2205_s9 = sshll.u32 %s2788_s8, 4  ;;  %s2206_s9 = int_to_ptr.vmem [resolvable:$true] %s2205_s9 }
  0x15   :  { %s2760_s10 = scalar_lea.vmem %s2206_s9, 512  ;;  %p2765_p1 = scmp.lt.s32.totalorder %s2206_s9, %s2206_s9 }
  0x16   :  { %2403 = vmatpush3.bf16.msra.mxu1 %v2603_v39  ;;  %p2761_p0 = scmp.ne.s32.totalorder %s2206_s9, %s2760_s10  ;;  %p2766_p2 = scmp.lt.s32.totalorder %s2760_s10, %s2760_s10 }
  0x18   :  { %p2767_p3 = por %p2766_p2, %p2765_p1 }
  0x1a   :  { %p2768_p4 = pnand %p2767_p3, %p2761_p0 }
  0xce   :  { %v2398_v6 = vpop.f32.mrf.mxu1 }
  0xcf   :  { %v2829_v7 = vadd.f32 %v2398_v6, %v2223_v5 }
  0xd0   :  { %v95_v8 = vpop.f32.mrf.mxu1 }
  0xd1   :  { %v2831_v9 = vadd.f32 %v2223_v5, %v95_v8  ;;  %v126_v10 = vsel %vm119_vm1, %v2829_v7, 0.0 }
  0xd2   :  { %127 = vadd.xlane.f32.xlu1 %v126_v10  ;;  %v2399_v11 = vpop.f32.mrf.mxu1 }
  0xd3   :  { %v2835_v12 = vadd.f32 %v2399_v11, %v2223_v5  ;;  %v120_v13 = vsel %vm119_vm1, %v2831_v9, 0.0  ;;  %v2226_v11 = vld [vmem:[%s3325_s2 + $0x83] ss:$0 sm:$0xff] }
  0xd4   :  { %121 = vadd.xlane.f32.xlu0 %v120_v13  ;;  %v98_v14 = vpop.f32.mrf.mxu1 }
  0xd5   :  { %v2839_v15 = vadd.f32 %v2223_v5, %v98_v14  ;;  %v129_v16 = vsel %vm119_vm1, %v2835_v12, 0.0 }
  0xd6   :  { %130 = vadd.xlane.f32.xlu1 %v129_v16 }
  0xd7   :  { %v123_v17 = vsel %vm119_vm1, %v2839_v15, 0.0 }
  0xd8   :  { %124 = vadd.xlane.f32.xlu0 %v123_v17 }
 0x15b   :  { %v128_v18 = vpop.xlane.xlu1 %127 }
 0x15c   :  { %v135_v19 = vmul.f32 0.03125, %v128_v18 }
 0x15d   :  { %v122_v20 = vpop.xlane.xlu0 %121 }
 0x15e   :  { %v133_v21 = vmul.f32 0.03125, %v122_v20  ;;  %v139_v23 = vsub.f32 %v2829_v7, %v135_v19 }
 0x15f   :  { %v131_v22 = vpop.xlane.xlu1 %130 }
 0x160   :  { %v137_v24 = vsub.f32 %v2831_v9, %v133_v21  ;;  %v136_v25 = vmul.f32 0.03125, %v131_v22  ;;  %v143_v32 = vmul.f32 %v139_v23, %v139_v23 }
 0x161   :  { %v125_v26 = vpop.xlane.xlu0 %124 }
 0x162   :  { %v134_v27 = vmul.f32 0.03125, %v125_v26  ;;  %v141_v28 = vmul.f32 %v137_v24, %v137_v24  ;;  %v140_v29 = vsub.f32 %v2835_v12, %v136_v25  ;;  %v151_v34 = vsel %vm119_vm1, %v143_v32, 0.0 }
 0x164   :  { %v138_v30 = vsub.f32 %v2839_v15, %v134_v27  ;;  %v145_v31 = vsel %vm119_vm1, %v141_v28, 0.0  ;;  %v144_v36 = vmul.f32 %v140_v29, %v140_v29  ;;  %v271_v28 = vld [vmem:[%s3325_s2 + $0x20] sm:$0xff] }
 0x165   :  { %146 = vadd.xlane.f32.xlu0 %v145_v31 }
 0x166   :  { %v142_v33 = vmul.f32 %v138_v30, %v138_v30  ;;  %v154_v37 = vsel %vm119_vm1, %v144_v36, 0.0  ;;  %v273_v36 = vld [vmem:[%s3325_s2 + $0x30] sm:$0xff] }
 0x168   :  { %v148_v35 = vsel %vm119_vm1, %v142_v33, 0.0  ;;  %v272_v33 = vld [vmem:[%s3325_s2 + $0x28] sm:$0xff] }
 0x169   :  { %152 = vadd.xlane.f32.xlu0 %v151_v34  ;;  %149 = vadd.xlane.f32.xlu1 %v148_v35 }
 0x16d   :  { %155 = vadd.xlane.f32.xlu1 %v154_v37 }
 0x1ee   :  { %v147_v40 = vpop.xlane.xlu0 %146 }
 0x1ef   :  { %v157_v41 = vmul.f32 0.03125, %v147_v40 }
 0x1f1   :  { %v161_v42 = vadd.f32 1e-05, %v157_v41 }
 0x1f2   :  { %v150_v43 = vpop.xlane.xlu1 %149  ;;  %v153_v44 = vpop.xlane.xlu0 %152 }
 0x1f3   :  { %2632 = vrsqrt.f32 %v161_v42  ;;  %v158_v45 = vmul.f32 0.03125, %v150_v43  ;;  %v159_v46 = vmul.f32 0.03125, %v153_v44 }
 0x1f5   :  { %v162_v47 = vadd.f32 1e-05, %v158_v45  ;;  %v163_v48 = vadd.f32 1e-05, %v159_v46 }
 0x1f6   :  { %v156_v49 = vpop.xlane.xlu1 %155 }
 0x1f7   :  { %2634 = vrsqrt.f32 %v162_v47  ;;  %v160_v50 = vmul.f32 0.03125, %v156_v49 }
 0x1f8   :  { %2636 = vrsqrt.f32 %v163_v48 }
 0x1f9   :  { %v164_v51 = vadd.f32 1e-05, %v160_v50 }
 0x1fb   :  { %2638 = vrsqrt.f32 %v164_v51 }
 0x200   :  { %v2633_v52 = vpop.eup %2632 }
 0x201   :  { %v169_v53 = vmul.f32 %v2633_v52, %v137_v24 }
 0x203   :  { %v178_v58 = vmul.f32 %v2224_v54, %v169_v53 }
 0x204   :  { %v2635_v55 = vpop.eup %2634 }
 0x205   :  { %v2637_v56 = vpop.eup %2636  ;;  %v170_v57 = vmul.f32 %v2635_v55, %v138_v30  ;;  %v187_v0 = vadd.f32 %v2225_v60, %v178_v58  ;;  %v274_v30 = vld [vmem:[%s3325_s2 + $0x38] sm:$0xff] }
 0x206   :  { %v171_v59 = vmul.f32 %v2637_v56, %v139_v23 }
 0x207   :  { %v179_v61 = vmul.f32 %v2224_v54, %v170_v57 }
 0x208   :  { %v2639_v62 = vpop.eup %2638  ;;  %v180_v2 = vmul.f32 %v2224_v54, %v171_v59 }
 0x209   :  { %v172_v63 = vmul.f32 %v2639_v62, %v140_v29  ;;  %v188_v1 = vadd.f32 %v2225_v60, %v179_v61 }
 0x20a   :  { %v189_v5 = vadd.f32 %v2225_v60, %v180_v2 }
 0x20b   :  { %v191_v3 = vpack.c.bf16 %v188_v1, %v187_v0  ;;  %v181_v4 = vmul.f32 %v2224_v54, %v172_v63 }
 0x20d   :  { %2404 = vmatprep.mubr.msk.bf16.mxu1 %vm119_vm1, %v191_v3  ;;  %v190_v6 = vadd.f32 %v2225_v60, %v181_v4 }
 0x20f   :  { %v192_v8 = vpack.c.bf16 %v190_v6, %v189_v5 }
 0x211   :  { %2405 = vmatmul.mubr.msk.bf16.vlgmr.msra.gmra.mxu1 %vm119_vm1, %v192_v8 }
 0x2d1   :  { %v2406_v10 = vpop.f32.mrf.mxu1 }
 0x2d2   :  { %v263_v16 = vadd.f32 %v2406_v10, %v2226_v11 }
 0x2d3   :  { %v254_v13 = vpop.f32.mrf.mxu1 }
 0x2d4   :  { %v255_v19 = vadd.f32 %v2226_v11, %v254_v13 }
 0x2d5   :  { %v2407_v14 = vpop.f32.mrf.mxu1 }
 0x2d6   :  { %v266_v17 = vadd.f32 %v2407_v14, %v2226_v11 }
 0x2d7   :  { %v257_v18 = vpop.f32.mrf.mxu1 }
 0x2d8   :  { %v2870_v20 = vpack.c.bf16 %v266_v17, %v263_v16  ;;  %v258_v21 = vadd.f32 %v2226_v11, %v257_v18 }
 0x2da   :  { %v2872_v22 = vpack.c.bf16 %v258_v21, %v255_v19  ;;  %279 = vrot.lane.b32.xlu0 %v2870_v20, %s2782_s6 }
 0x2dc   :  { %277 = vrot.lane.b32.xlu1 %v2872_v22, %s2782_s6  ;;  %2412 = vmatprep.mubr.msk.bf16.mxu1 %vm281_vm2, %v2872_v22 }
 0x34c   :  { %v280_v23 = vpop.permute.xlu0 %279 }
 0x34d   :  { %v292_v24 = vsel %vm281_vm2, %v280_v23, 0  ;;  %2560 = vmatprep.subr.msk.bf16.mxu1 %vm281_vm2, %v280_v23 }
 0x34e   :  { %2409 = vmatpush3.bf16.xpose.msra.mxu1 %v292_v24  ;;  %v278_v25 = vpop.permute.xlu1 %277 }
 0x34f   :  { %2561 = vmatprep.subr.msk.bf16.mxu1 %vm281_vm2, %v278_v25  ;;  %v289_v26 = vsel %vm281_vm2, %v278_v25, 0 }
 0x356   :  { %2411 = vmatpush3.bf16.xpose.msra.mxu1 %v289_v26 }
 0x35d   :  { %2413 = vmatmul.mubr.msk.bf16.vlgmr.msra.gmra.mxu1 %vm281_vm2, %v2870_v20 }
 0x41d   :  { %v2414_v27 = vpop.f32.mrf.mxu1 }
 0x41e   :  { %v337_v39 = vadd.f32 %v2414_v27, %v273_v36 }
 0x41f   :  { %v328_v29 = vpop.f32.mrf.mxu1 }
 0x420   :  { %v329_v31 = vadd.f32 %v328_v29, %v271_v28  ;;  %v349_v42 = vsel %vm119_vm1, %v337_v39, -inf }
 0x421   :  { %v2415_v32 = vpop.f32.mrf.mxu1 }
 0x422   :  { %v340_v34 = vadd.f32 %v2415_v32, %v274_v30  ;;  %v343_v35 = vsel %vm119_vm1, %v329_v31, -inf  ;;  %v450_v32 = vld [vmem:[%s3325_s2 + $0x40] sm:$0xff] }
 0x423   :  { %v331_v37 = vpop.f32.mrf.mxu1  ;;  %344 = vmax.xlane.f32.xlu1 %v343_v35 }
 0x424   :  { %v332_v38 = vadd.f32 %v331_v37, %v272_v33  ;;  %v352_v41 = vsel %vm119_vm1, %v340_v34, -inf  ;;  %v452_v33 = vld [vmem:[%s3325_s2 + $0x50] sm:$0xff]  ;;  %v451_v37 = vld [vmem:[%s3325_s2 + $0x48] sm:$0xff] }
 0x426   :  { %v346_v40 = vsel %vm119_vm1, %v332_v38, -inf }
 0x427   :  { %347 = vmax.xlane.f32.xlu0 %v346_v40  ;;  %353 = vmax.xlane.f32.xlu1 %v352_v41  ;;  %v453_v40 = vld [vmem:[%s3325_s2 + $0x58] sm:$0xff] }
 0x42b   :  { %350 = vmax.xlane.f32.xlu0 %v349_v42 }
 0x438   :  { %389 = vrot.lane.b32.xlu1 %v2872_v22, %s2783_s15 }
 0x4ac   :  { %v345_v43 = vpop.xlane.xlu1 %344 }
 0x4ad   :  { %v355_v48 = vsub.f32 %v329_v31, %v345_v43 }
 0x4af   :  { %v359_v53 = vmul.f32 1.442695, %v355_v48 }
 0x4b0   :  { %v348_v44 = vpop.xlane.xlu0 %347  ;;  %v354_v45 = vpop.xlane.xlu1 %353 }
 0x4b1   :  { %v356_v46 = vsub.f32 %v332_v38, %v348_v44  ;;  %v358_v47 = vsub.f32 %v340_v34, %v354_v45 }
 0x4b3   :  { %v365_v49 = vmul.f32 1.442695, %v358_v47  ;;  %v361_v50 = vmul.f32 1.442695, %v356_v46 }
 0x4b4   :  { %v351_v51 = vpop.xlane.xlu0 %350  ;;  %v390_v63 = vpop.permute.xlu1 %389 }
 0x4b5   :  { %v357_v52 = vsub.f32 %v337_v39, %v351_v51  ;;  %2640 = vpow2.f32 %v365_v49 }
 0x4b6   :  { %2642 = vpow2.f32 %v361_v50 }
 0x4b7   :  { %v363_v54 = vmul.f32 1.442695, %v357_v52 }
 0x4b9   :  { %2644 = vpow2.f32 %v363_v54 }
 0x4ba   :  { %2646 = vpow2.f32 %v359_v53 }
 0x4c2   :  { %v2641_v55 = vpop.eup %2640 }
 0x4c3   :  { %v376_v56 = vsel %vm119_vm1, %v2641_v55, 0.0  ;;  %v2643_v57 = vpop.eup %2642 }
 0x4c4   :  { %377 = vadd.xlane.f32.xlu1 %v376_v56  ;;  %v370_v61 = vsel %vm119_vm1, %v2643_v57, 0.0 }
 0x4c6   :  { %v2645_v58 = vpop.eup %2644 }
 0x4c7   :  { %v373_v59 = vsel %vm119_vm1, %v2645_v58, 0.0  ;;  %v2647_v60 = vpop.eup %2646 }
 0x4c8   :  { %374 = vadd.xlane.f32.xlu0 %v373_v59  ;;  %371 = vadd.xlane.f32.xlu1 %v370_v61  ;;  %v367_v62 = vsel %vm119_vm1, %v2647_v60, 0.0 }
 0x4cc   :  { %368 = vadd.xlane.f32.xlu0 %v367_v62 }
 0x4d9   :  { %460 = vrot.lane.b32.xlu1 %v2870_v20, %s2784_s16 }
 0x4dd   :  { %458 = vrot.lane.b32.xlu1 %v2872_v22, %s2784_s16 }
 0x4e1   :  { %456 = vrot.lane.b32.xlu1 %v2870_v20, %s2785_s17 }
 0x4e2   :  { %391 = vrot.lane.b32.xlu0 %v2870_v20, %s2783_s15 }
 0x4e6   :  { %454 = vrot.lane.b32.xlu0 %v2872_v22, %s2785_s17 }
 0x54d   :  { %v378_v0 = vpop.xlane.xlu1 %377 }
 0x551   :  { %v375_v1 = vpop.xlane.xlu0 %374  ;;  %v372_v2 = vpop.xlane.xlu1 %371 }
 0x552   :  { %2648 = vrcp.f32 %v375_v1 }
 0x553   :  { %2650 = vrcp.f32 %v372_v2 }
 0x554   :  { %2652 = vrcp.f32 %v378_v0 }
 0x555   :  { %v369_v3 = vpop.xlane.xlu0 %368  ;;  %v461_v5 = vpop.permute.xlu1 %460 }
 0x556   :  { %2654 = vrcp.f32 %v369_v3  ;;  %v472_v21 = vsel %vm281_vm2, %v461_v5, 0 }
 0x559   :  { %v392_v4 = vpop.permute.xlu0 %391  ;;  %v459_v24 = vpop.permute.xlu1 %458 }
 0x55a   :  { %2416 = vmatprep.subr.bf16.mxu0 %v392_v4  ;;  %v469_v25 = vsel %vm281_vm2, %v459_v24, 0 }
 0x55b   :  { %2417 = vmatpush3.bf16.msra.mxu0 %v392_v4 }
 0x55c   :  { %2418 = vmatprep.subr.bf16.mxu0 %v390_v63 }
 0x55d   :  { %v455_v23 = vpop.permute.xlu0 %454  ;;  %v457_v26 = vpop.permute.xlu1 %456 }
 0x55f   :  { %2419 = vmatpush3.bf16.msra.mxu0 %v390_v63  ;;  %v2649_v6 = vpop.eup %2648 }
 0x560   :  { %2562 = vmatprep.subr.msk.bf16.mxu0 %vm281_vm2, %v461_v5  ;;  %v2651_v8 = vpop.eup %2650  ;;  %v385_v13 = vmul.f32 %v2649_v6, %v2645_v58 }
 0x561   :  { %v2653_v10 = vpop.eup %2652  ;;  %v384_v16 = vmul.f32 %v2651_v8, %v2643_v57 }
 0x562   :  { %v386_v17 = vmul.f32 %v2653_v10, %v2641_v55 }
 0x563   :  { %v2655_v11 = vpop.eup %2654 }
 0x564   :  { %v383_v14 = vmul.f32 %v2655_v11, %v2647_v60  ;;  %v388_v19 = vpack.c.bf16 %v386_v17, %v385_v13 }
 0x566   :  { %v387_v18 = vpack.c.bf16 %v384_v16, %v383_v14 }
 0x568   :  { %2420 = vmatprep.mubr.msk.bf16.mxu0 %vm119_vm1, %v387_v18 }
 0x569   :  { %2421 = vmatmul.mubr.msk.bf16.vlgmr.msra.gmra.mxu0 %vm119_vm1, %v388_v19 }
 0x56a   :  { %2425 = vmatpush3.bf16.xpose.msra.mxu0 %v472_v21  ;;  %2428 = vmatprep.mubr.msk.bf16.mxu0 %vm281_vm2, %v455_v23  ;;  %v2604_v23 = vld [vmem:[%s3324_s1 + $0x30] sm:$0xff]  }
 0x56b   :  { %2563 = vmatprep.subr.msk.bf16.mxu0 %vm281_vm2, %v459_v24 }
 0x572   :  { %2427 = vmatpush3.bf16.xpose.msra.mxu0 %v469_v25  ;;  %v2605_v25 = vld [vmem:[%s3324_s1 + $0x28] sm:$0xff]  }
 0x579   :  { %2429 = vmatmul.mubr.msk.bf16.vlgmr.msra.gmra.mxu0 %vm281_vm2, %v457_v26 }
 0x629   :  { %v2926_v27 = vpop.f32.mrf.mxu0 }
 0x62b   :  { %v2928_v28 = vpop.f32.mrf.mxu0 }
 0x62d   :  { %v2930_v29 = vpop.f32.mrf.mxu0 }
 0x62f   :  { %v2932_v30 = vpop.f32.mrf.mxu0 }
 0x639   :  { %v2430_v31 = vpop.f32.mrf.mxu0 }
 0x63a   :  { %v517_v38 = vadd.f32 %v2430_v31, %v452_v33 }
 0x63b   :  { %v508_v34 = vpop.f32.mrf.mxu0 }
 0x63c   :  { %v509_v35 = vadd.f32 %v508_v34, %v450_v32  ;;  %v529_v45 = vsel %vm119_vm1, %v517_v38, -inf }
 0x63d   :  { %v2431_v36 = vpop.f32.mrf.mxu0 }
 0x63e   :  { %v523_v39 = vsel %vm119_vm1, %v509_v35, -inf  ;;  %v520_v43 = vadd.f32 %v2431_v36, %v453_v40 }
 0x63f   :  { %v511_v41 = vpop.f32.mrf.mxu0  ;;  %524 = vmax.xlane.f32.xlu0 %v523_v39 }
 0x640   :  { %v512_v42 = vadd.f32 %v511_v41, %v451_v37  ;;  %v532_v46 = vsel %vm119_vm1, %v520_v43, -inf }
 0x642   :  { %v526_v44 = vsel %vm119_vm1, %v512_v42, -inf }
 0x643   :  { %527 = vmax.xlane.f32.xlu1 %v526_v44  ;;  %530 = vmax.xlane.f32.xlu0 %v529_v45 }
 0x647   :  { %533 = vmax.xlane.f32.xlu0 %v532_v46 }
 0x6c8   :  { %v525_v47 = vpop.xlane.xlu0 %524 }
 0x6c9   :  { %v535_v48 = vsub.f32 %v509_v35, %v525_v47 }
 0x6cb   :  { %v539_v54 = vmul.f32 1.442695, %v535_v48 }
 0x6cc   :  { %v528_v49 = vpop.xlane.xlu1 %527  ;;  %v531_v50 = vpop.xlane.xlu0 %530 }
 0x6cd   :  { %v537_v51 = vsub.f32 %v517_v38, %v531_v50  ;;  %v536_v52 = vsub.f32 %v512_v42, %v528_v49 }
 0x6cf   :  { %v543_v53 = vmul.f32 1.442695, %v537_v51  ;;  %v541_v57 = vmul.f32 1.442695, %v536_v52 }
 0x6d0   :  { %v534_v55 = vpop.xlane.xlu0 %533 }
 0x6d1   :  { %v538_v56 = vsub.f32 %v520_v43, %v534_v55  ;;  %2656 = vpow2.f32 %v543_v53 }
 0x6d2   :  { %2658 = vpow2.f32 %v539_v54 }
 0x6d3   :  { %v545_v58 = vmul.f32 1.442695, %v538_v56 }
 0x6d5   :  { %2660 = vpow2.f32 %v545_v58 }
 0x6d6   :  { %2662 = vpow2.f32 %v541_v57 }
 0x6de   :  { %v2657_v59 = vpop.eup %2656 }
 0x6df   :  { %v553_v60 = vsel %vm119_vm1, %v2657_v59, 0.0  ;;  %v2659_v61 = vpop.eup %2658 }
 0x6e0   :  { %554 = vadd.xlane.f32.xlu0 %v553_v60  ;;  %v547_v1 = vsel %vm119_vm1, %v2659_v61, 0.0 }
 0x6e2   :  { %v2661_v62 = vpop.eup %2660 }
 0x6e3   :  { %v556_v63 = vsel %vm119_vm1, %v2661_v62, 0.0  ;;  %v2663_v0 = vpop.eup %2662 }
 0x6e4   :  { %557 = vadd.xlane.f32.xlu1 %v556_v63  ;;  %548 = vadd.xlane.f32.xlu0 %v547_v1  ;;  %v550_v2 = vsel %vm119_vm1, %v2663_v0, 0.0 }
 0x6e8   :  { %551 = vadd.xlane.f32.xlu1 %v550_v2 }
 0x6f9   :  { %569 = vrot.lane.b32.xlu1 %v2872_v22, %s2786_s25 }
 0x6fa   :  { %571 = vrot.lane.b32.xlu0 %v2870_v20, %s2786_s25 }
 0x769   :  { %v555_v3 = vpop.xlane.xlu0 %554 }
 0x76d   :  { %v558_v4 = vpop.xlane.xlu1 %557  ;;  %v549_v5 = vpop.xlane.xlu0 %548 }
 0x76e   :  { %2664 = vrcp.f32 %v558_v4 }
 0x76f   :  { %2666 = vrcp.f32 %v549_v5 }
 0x770   :  { %2668 = vrcp.f32 %v555_v3 }
 0x771   :  { %v552_v6 = vpop.xlane.xlu1 %551  ;;  %v572_v8 = vpop.permute.xlu0 %571 }
 0x772   :  { %2670 = vrcp.f32 %v552_v6  ;;  %2432 = vmatprep.subr.bf16.mxu1 %v572_v8 }
 0x773   :  { %2433 = vmatpush3.bf16.msra.mxu1 %v572_v8 }
 0x775   :  { %v570_v10 = vpop.permute.xlu1 %569 }
 0x776   :  { %2434 = vmatprep.subr.bf16.mxu1 %v570_v10 }
 0x777   :  { %2435 = vmatpush3.bf16.msra.mxu1 %v570_v10 }
 0x778   :  { %2440 = vmatprep.subr.bf16.mxu1 %v2604_v23 }
 0x77b   :  { %v2665_v11 = vpop.eup %2664 }
 0x77c   :  { %v2667_v13 = vpop.eup %2666  ;;  %v566_v16 = vmul.f32 %v2665_v11, %v2661_v62 }
 0x77d   :  { %v2669_v22 = vpop.eup %2668  ;;  %v563_v20 = vmul.f32 %v2667_v13, %v2659_v61 }
 0x77e   :  { %v565_v18 = vmul.f32 %v2669_v22, %v2657_v59 }
 0x77f   :  { %v2671_v14 = vpop.eup %2670 }
 0x780   :  { %v564_v17 = vmul.f32 %v2671_v14, %v2663_v0  ;;  %v568_v21 = vpack.c.bf16 %v566_v16, %v565_v18  ;;  %v2606_v14 = vld [vmem:[%s3324_s1 + $0x40] sm:$0xff]   ;;  %v2607_v16 = vld [vmem:[%s3324_s1 + $0x38] sm:$0xff]  }
 0x781   :  { %2448 = vmatprep.subr.bf16.mxu0 %v2606_v14 }
 0x782   :  { %v567_v19 = vpack.c.bf16 %v564_v17, %v563_v20  ;;  %2449 = vmatpush3.bf16.msra.mxu0 %v2606_v14 }
 0x783   :  { %2450 = vmatprep.subr.bf16.mxu0 %v2607_v16 }
 0x784   :  { %2436 = vmatprep.mubr.msk.bf16.mxu1 %vm119_vm1, %v567_v19 }
 0x785   :  { %2437 = vmatmul.mubr.msk.bf16.vlgmr.msra.gmra.mxu1 %vm119_vm1, %v568_v21 }
 0x786   :  { %2441 = vmatpush3.bf16.msra.mxu1 %v2604_v23  ;;  %2451 = vmatpush3.bf16.msra.mxu0 %v2607_v16 }
 0x787   :  { %2442 = vmatprep.subr.bf16.mxu1 %v2605_v25 }
 0x78a   :  { %2443 = vmatpush3.bf16.msra.mxu1 %v2605_v25 }
 0x845   :  { %v2438_v24 = vpop.f32.mrf.mxu1 }
 0x847   :  { %v615_v26 = vpop.f32.mrf.mxu1 }
 0x849   :  { %v2439_v31 = vpop.f32.mrf.mxu1 }
 0x84a   :  { %v2582_v34 = vpack.i.bf16 %v2439_v31, %v2438_v24 }
 0x84b   :  { %v618_v32 = vpop.f32.mrf.mxu1 }
 0x84c   :  { %v2577_v33 = vpack.i.bf16 %v618_v32, %v615_v26 }
 0x84e   :  { %2578 = vrot.lane.b32.xlu1 %v2577_v33, %s2787_s30 }
 0x852   :  { %2583 = vrot.lane.b32.xlu1 %v2582_v34, %s2787_s30 }
 0x8c0   :  { %v2579_v35 = vpop.permute.xlu1 %2578 }
 0x8c1   :  { %v2581_v36 = vunpack.i.h.bf16 %v2579_v35  ;;  %v2580_v37 = vunpack.i.l.bf16 %v2579_v35 }
 0x8c3   :  { %v647_v38 = vsel %vm281_vm2, %v2932_v30, %v2581_v36  ;;  %v646_v39 = vsel %vm281_vm2, %v2928_v28, %v2580_v37  ;;  %v2243_v28 = vld [vmem:[%s3325_s2 + $0x84] ss:$0 sm:$0xff]  ;;  %v2244_v36 = vld [vmem:[%s3325_s2 + $0x85] ss:$0 sm:$0xff] }
 0x8c4   :  { %v650_v40 = vpack.c.bf16 %v647_v38, %v646_v39  ;;  %v2584_v41 = vpop.permute.xlu1 %2583 }
 0x8c5   :  { %v2586_v42 = vunpack.i.h.bf16 %v2584_v41  ;;  %v2585_v43 = vunpack.i.l.bf16 %v2584_v41 }
 0x8c6   :  { %2444 = vmatprep.mubr.msk.bf16.mxu1 %vm119_vm1, %v650_v40 }
 0x8c7   :  { %v649_v44 = vsel %vm281_vm2, %v2930_v29, %v2586_v42  ;;  %v648_v45 = vsel %vm281_vm2, %v2926_v27, %v2585_v43  ;;  %v2245_v42 = vld [vmem:[%s3325_s2 + $0x86] ss:$0 sm:$0xff] }
 0x8c8   :  { %v651_v46 = vpack.c.bf16 %v649_v44, %v648_v45 }
 0x8ca   :  { %2445 = vmatmul.mubr.msk.bf16.vlgmr.msra.gmra.mxu1 %vm119_vm1, %v651_v46 }
 0x98a   :  { %v2446_v47 = vpop.f32.mrf.mxu1 }
 0x98b   :  { %v730_v48 = vadd.f32 %v2446_v47, %v2243_v28 }
 0x98c   :  { %v708_v30 = vpop.f32.mrf.mxu1 }
 0x98d   :  { %v728_v49 = vadd.f32 %v2243_v28, %v708_v30  ;;  %v2985_v29 = vadd.f32 %v730_v48, %v2829_v7 }
 0x98e   :  { %v2447_v50 = vpop.f32.mrf.mxu1 }
 0x98f   :  { %v2982_v51 = vadd.f32 %v728_v49, %v2831_v9  ;;  %v731_v27 = vadd.f32 %v2447_v50, %v2243_v28  ;;  %v742_v9 = vsel %vm119_vm1, %v2985_v29, 0.0 }
 0x990   :  { %v711_v52 = vpop.f32.mrf.mxu1 }
 0x991   :  { %v729_v53 = vadd.f32 %v2243_v28, %v711_v52  ;;  %v736_v54 = vsel %vm119_vm1, %v2982_v51, 0.0  ;;  %v2993_v56 = vadd.f32 %v731_v27, %v2835_v12  ;;  %v2608_v27 = vld [vmem:[%s3324_s1 + $0x80] sm:$0xff]  }
 0x992   :  { %737 = vadd.xlane.f32.xlu0 %v736_v54  ;;  %2456 = vmatprep.subr.bf16.mxu1 %v2608_v27  ;;  %v2610_v54 = vld [vmem:[%s3324_s1 + $0x70] sm:$0xff]  }
 0x993   :  { %v2990_v55 = vadd.f32 %v729_v53, %v2839_v15  ;;  %v745_v7 = vsel %vm119_vm1, %v2993_v56, 0.0  ;;  %2457 = vmatpush3.bf16.msra.mxu1 %v2608_v27  ;;  %v2609_v53 = vld [vmem:[%s3324_s1 + $0x78] sm:$0xff]  }
 0x994   :  { %2458 = vmatprep.subr.bf16.mxu1 %v2609_v53 }
 0x995   :  { %v739_v57 = vsel %vm119_vm1, %v2990_v55, 0.0 }
 0x996   :  { %743 = vadd.xlane.f32.xlu0 %v742_v9  ;;  %740 = vadd.xlane.f32.xlu1 %v739_v57  ;;  %v2611_v9 = vld [vmem:[%s3324_s1 + $0x68] sm:$0xff]   ;;  %v2612_v57 = vld [vmem:[%s3324_s1 + $0x60] sm:$0xff]  }
 0x997   :  { %2459 = vmatpush3.bf16.msra.mxu1 %v2609_v53 }
 0x998   :  { %2460 = vmatprep.subr.bf16.mxu1 %v2610_v54 }
 0x99a   :  { %746 = vadd.xlane.f32.xlu0 %v745_v7  ;;  %v2613_v7 = vld [vmem:[%s3324_s1 + $0x58] sm:$0xff]  }
 0x99b   :  { %2461 = vmatpush3.bf16.msra.mxu1 %v2610_v54 }
 0x99c   :  { %2462 = vmatprep.subr.bf16.mxu1 %v2611_v9 }
 0x99f   :  { %2463 = vmatpush3.bf16.msra.mxu1 %v2611_v9 }
 0x9a0   :  { %2464 = vmatprep.subr.bf16.mxu1 %v2612_v57 }
 0x9a3   :  { %2465 = vmatpush3.bf16.msra.mxu1 %v2612_v57 }
 0x9a4   :  { %2466 = vmatprep.subr.bf16.mxu1 %v2613_v7 }
 0x9a7   :  { %2467 = vmatpush3.bf16.msra.mxu1 %v2613_v7 }
 0xa1b   :  { %v738_v58 = vpop.xlane.xlu0 %737 }
 0xa1c   :  { %v748_v59 = vmul.f32 0.03125, %v738_v58  ;;  %v2614_v58 = vld [vmem:[%s3324_s1 + $0x50] sm:$0xff]  }
 0xa1d   :  { %2468 = vmatprep.subr.bf16.mxu1 %v2614_v58 }
 0xa1e   :  { %v752_v15 = vsub.f32 %v2982_v51, %v748_v59  ;;  %v2615_v59 = vld [vmem:[%s3324_s1 + $0x48] sm:$0xff]   ;;  %2469 = vmatpush3.bf16.msra.mxu1 %v2614_v58 }
 0xa1f   :  { %v744_v60 = vpop.xlane.xlu0 %743  ;;  %v741_v61 = vpop.xlane.xlu1 %740  ;;  %2470 = vmatprep.subr.bf16.mxu1 %v2615_v59 }
 0xa20   :  { %v750_v12 = vmul.f32 0.03125, %v744_v60  ;;  %v749_v62 = vmul.f32 0.03125, %v741_v61  ;;  %v756_v63 = vmul.f32 %v752_v15, %v752_v15 }
 0xa22   :  { %v754_v0 = vsub.f32 %v2985_v29, %v750_v12  ;;  %v753_v1 = vsub.f32 %v2990_v55, %v749_v62  ;;  %v760_v2 = vsel %vm119_vm1, %v756_v63, 0.0  ;;  %2471 = vmatpush3.bf16.msra.mxu1 %v2615_v59 }
 0xa23   :  { %761 = vadd.xlane.f32.xlu0 %v760_v2  ;;  %v747_v3 = vpop.xlane.xlu0 %746 }
 0xa24   :  { %v751_v4 = vmul.f32 0.03125, %v747_v3  ;;  %v758_v5 = vmul.f32 %v754_v0, %v754_v0  ;;  %v757_v6 = vmul.f32 %v753_v1, %v753_v1 }
 0xa26   :  { %v755_v8 = vsub.f32 %v2993_v56, %v751_v4  ;;  %v766_v10 = vsel %vm119_vm1, %v758_v5, 0.0  ;;  %v763_v11 = vsel %vm119_vm1, %v757_v6, 0.0 }
 0xa27   :  { %767 = vadd.xlane.f32.xlu0 %v766_v10  ;;  %764 = vadd.xlane.f32.xlu1 %v763_v11 }
 0xa28   :  { %v759_v13 = vmul.f32 %v755_v8, %v755_v8 }
 0xa2a   :  { %v769_v22 = vsel %vm119_vm1, %v759_v13, 0.0 }
 0xa2b   :  { %770 = vadd.xlane.f32.xlu1 %v769_v22 }
 0xaac   :  { %v762_v20 = vpop.xlane.xlu0 %761 }
 0xaad   :  { %v772_v17 = vmul.f32 0.03125, %v762_v20 }
 0xaaf   :  { %v776_v18 = vadd.f32 1e-05, %v772_v17 }
 0xab0   :  { %v768_v19 = vpop.xlane.xlu0 %767  ;;  %v765_v21 = vpop.xlane.xlu1 %764 }
 0xab1   :  { %2672 = vrsqrt.f32 %v776_v18  ;;  %v774_v23 = vmul.f32 0.03125, %v768_v19  ;;  %v773_v24 = vmul.f32 0.03125, %v765_v21 }
 0xab3   :  { %v778_v25 = vadd.f32 1e-05, %v774_v23  ;;  %v777_v26 = vadd.f32 1e-05, %v773_v24 }
 0xab4   :  { %v771_v31 = vpop.xlane.xlu1 %770 }
 0xab5   :  { %2674 = vrsqrt.f32 %v778_v25  ;;  %v775_v32 = vmul.f32 0.03125, %v771_v31 }
 0xab6   :  { %2676 = vrsqrt.f32 %v777_v26 }
 0xab7   :  { %v779_v33 = vadd.f32 1e-05, %v775_v32 }
 0xab9   :  { %2678 = vrsqrt.f32 %v779_v33 }
 0xabe   :  { %v2673_v34 = vpop.eup %2672 }
 0xabf   :  { %v784_v35 = vmul.f32 %v2673_v34, %v752_v15  ;;  %v2246_v15 = vld [vmem:[%s3325_s2 + $0x87] ss:$0 sm:$0xff] }
 0xac1   :  { %v793_v41 = vmul.f32 %v2244_v36, %v784_v35 }
 0xac2   :  { %v2675_v37 = vpop.eup %2674 }
 0xac3   :  { %v2677_v38 = vpop.eup %2676  ;;  %v786_v39 = vmul.f32 %v2675_v37, %v754_v0  ;;  %v802_v47 = vadd.f32 %v2245_v42, %v793_v41 }
 0xac4   :  { %v785_v40 = vmul.f32 %v2677_v38, %v753_v1 }
 0xac5   :  { %v795_v46 = vmul.f32 %v2244_v36, %v786_v39 }
 0xac6   :  { %v2679_v43 = vpop.eup %2678  ;;  %v794_v44 = vmul.f32 %v2244_v36, %v785_v40 }
 0xac7   :  { %v787_v45 = vmul.f32 %v2679_v43, %v755_v8  ;;  %v804_v49 = vadd.f32 %v2245_v42, %v795_v46 }
 0xac8   :  { %v803_v28 = vadd.f32 %v2245_v42, %v794_v44 }
 0xac9   :  { %v796_v30 = vmul.f32 %v2244_v36, %v787_v45 }
 0xaca   :  { %v806_v48 = vpack.c.bf16 %v803_v28, %v802_v47 }
 0xacb   :  { %v805_v50 = vadd.f32 %v2245_v42, %v796_v30 }
 0xacc   :  { %2452 = vmatprep.mubr.msk.bf16.mxu0 %vm119_vm1, %v806_v48  ;;  %v2259_v48 = vld [vmem:[%s3325_s2 + $0x88] ss:$0 sm:$0xff] }
 0xacd   :  { %v807_v52 = vpack.c.bf16 %v805_v50, %v804_v49 }
 0xacf   :  { %2453 = vmatmul.mubr.msk.bf16.vlgmr.msra.gmra.mxu0 %vm119_vm1, %v807_v52 }
 0xb8f   :  { %v2454_v60 = vpop.f32.mrf.mxu0 }
 0xb90   :  { %v878_v61 = vadd.f32 %v2454_v60, %v2246_v15 }
 0xb91   :  { %v869_v12 = vpop.f32.mrf.mxu0 }
 0xb92   :  { %v886_v62 = vmul.f32 %v878_v61, %v878_v61  ;;  %v870_v63 = vadd.f32 %v2246_v15, %v869_v12 }
 0xb93   :  { %v2455_v0 = vpop.f32.mrf.mxu0 }
 0xb94   :  { %v890_v1 = vmul.f32 %v886_v62, %v878_v61  ;;  %v884_v2 = vmul.f32 %v870_v63, %v870_v63  ;;  %v881_v3 = vadd.f32 %v2455_v0, %v2246_v15 }
 0xb95   :  { %v872_v4 = vpop.f32.mrf.mxu0 }
 0xb96   :  { %v894_v5 = vmul.f32 0.044715, %v890_v1  ;;  %v888_v6 = vmul.f32 %v884_v2, %v870_v63  ;;  %v887_v8 = vmul.f32 %v881_v3, %v881_v3  ;;  %v873_v10 = vadd.f32 %v2246_v15, %v872_v4 }
 0xb98   :  { %v898_v11 = vadd.f32 %v894_v5, %v878_v61  ;;  %v892_v13 = vmul.f32 0.044715, %v888_v6  ;;  %v891_v22 = vmul.f32 %v887_v8, %v881_v3  ;;  %v885_v14 = vmul.f32 %v873_v10, %v873_v10 }
 0xb9a   :  { %v902_v16 = vmul.f32 0.7978846, %v898_v11  ;;  %v896_v20 = vadd.f32 %v892_v13, %v870_v63  ;;  %v895_v17 = vmul.f32 0.044715, %v891_v22  ;;  %v889_v18 = vmul.f32 %v885_v14, %v873_v10 }
 0xb9c   :  { %v900_v19 = vmul.f32 0.7978846, %v896_v20  ;;  %v899_v21 = vadd.f32 %v895_v17, %v881_v3  ;;  %v893_v23 = vmul.f32 0.044715, %v889_v18  ;;  %2680 = vtanh.f32 %v902_v16 }
 0xb9e   :  { %2682 = vtanh.f32 %v900_v19  ;;  %v903_v24 = vmul.f32 0.7978846, %v899_v21  ;;  %v897_v25 = vadd.f32 %v893_v23, %v873_v10 }
 0xba0   :  { %2684 = vtanh.f32 %v903_v24  ;;  %v901_v26 = vmul.f32 0.7978846, %v897_v25 }
 0xba2   :  { %2686 = vtanh.f32 %v901_v26 }
 0xba9   :  { %v2681_v31 = vpop.eup %2680 }
 0xbaa   :  { %v910_v35 = vadd.f32 1.0, %v2681_v31 }
 0xbab   :  { %v2683_v32 = vpop.eup %2682 }
 0xbac   :  { %v908_v33 = vadd.f32 1.0, %v2683_v32  ;;  %v914_v41 = vmul.f32 0.5, %v910_v35  ;;  %v2260_v35 = vld [vmem:[%s3325_s2 + $0x89] ss:$0 sm:$0xff] }
 0xbad   :  { %v2685_v34 = vpop.eup %2684 }
 0xbae   :  { %v911_v36 = vadd.f32 1.0, %v2685_v34  ;;  %v912_v40 = vmul.f32 0.5, %v908_v33  ;;  %v918_v46 = vmul.f32 %v914_v41, %v878_v61 }
 0xbaf   :  { %v2687_v37 = vpop.eup %2686 }
 0xbb0   :  { %v915_v38 = vmul.f32 0.5, %v911_v36  ;;  %v909_v39 = vadd.f32 1.0, %v2687_v37  ;;  %v916_v44 = vmul.f32 %v912_v40, %v870_v63  ;;  %v2261_v37 = vld [vmem:[%s3325_s2 + $0x8a] ss:$0 sm:$0xff]  ;;  %v1118_v40 = vld [vmem:[%s3325_s2] sm:$0xff] }
 0xbb2   :  { %v913_v42 = vmul.f32 0.5, %v909_v39  ;;  %v919_v43 = vmul.f32 %v915_v38, %v881_v3 }
 0xbb4   :  { %v917_v45 = vmul.f32 %v913_v42, %v873_v10  ;;  %v921_v28 = vpack.c.bf16 %v919_v43, %v918_v46 }
 0xbb6   :  { %v920_v47 = vpack.c.bf16 %v917_v45, %v916_v44 }
 0xbb8   :  { %2472 = vmatprep.mubr.bf16.mxu1 %v920_v47 }
 0xbb9   :  { %2473 = vmatmul.mubr.bf16.vlgmr.msra.gmra.mxu1 %v921_v28  ;;  %v1120_v28 = vld [vmem:[%s3325_s2 + $0x10] sm:$0xff] }
 0xc79   :  { %v2474_v30 = vpop.f32.mrf.mxu1 }
 0xc7a   :  { %v1042_v50 = vadd.f32 %v2474_v30, %v2259_v48 }
 0xc7b   :  { %v1020_v49 = vpop.f32.mrf.mxu1 }
 0xc7c   :  { %v1040_v52 = vadd.f32 %v2259_v48, %v1020_v49  ;;  %v1046_v58 = vadd.f32 %v1042_v50, %v2985_v29  ;;  %v1119_v50 = vld [vmem:[%s3325_s2 + $0x8] sm:$0xff] }
 0xc7d   :  { %v2475_v27 = vpop.f32.mrf.mxu1 }
 0xc7e   :  { %v1044_v53 = vadd.f32 %v1040_v52, %v2982_v51  ;;  %v1043_v9 = vadd.f32 %v2475_v27, %v2259_v48  ;;  %v1054_v15 = vsel %vm119_vm1, %v1046_v58, 0.0 }
 0xc7f   :  { %v1023_v54 = vpop.f32.mrf.mxu1 }
 0xc80   :  { %v1041_v57 = vadd.f32 %v2259_v48, %v1023_v54  ;;  %v1048_v7 = vsel %vm119_vm1, %v1044_v53, 0.0  ;;  %v1047_v61 = vadd.f32 %v1043_v9, %v2993_v56 }
 0xc81   :  { %1049 = vadd.xlane.f32.xlu0 %v1048_v7 }
 0xc82   :  { %v1045_v59 = vadd.f32 %v1041_v57, %v2990_v55  ;;  %v1057_v51 = vsel %vm119_vm1, %v1047_v61, 0.0  ;;  %v1121_v57 = vld [vmem:[%s3325_s2 + $0x18] sm:$0xff] }
 0xc84   :  { %v1051_v60 = vsel %vm119_vm1, %v1045_v59, 0.0 }
 0xc85   :  { %1055 = vadd.xlane.f32.xlu0 %v1054_v15  ;;  %1052 = vadd.xlane.f32.xlu1 %v1051_v60 }
 0xc89   :  { %1058 = vadd.xlane.f32.xlu1 %v1057_v51 }
 0xd0a   :  { %v1050_v12 = vpop.xlane.xlu0 %1049 }
 0xd0b   :  { %v1060_v62 = vmul.f32 0.03125, %v1050_v12 }
 0xd0d   :  { %v1064_v63 = vsub.f32 %v1044_v53, %v1060_v62 }
 0xd0e   :  { %v1056_v0 = vpop.xlane.xlu0 %1055  ;;  %v1053_v1 = vpop.xlane.xlu1 %1052 }
 0xd0f   :  { %v1062_v29 = vmul.f32 0.03125, %v1056_v0  ;;  %v1061_v2 = vmul.f32 0.03125, %v1053_v1  ;;  %v1068_v3 = vmul.f32 %v1064_v63, %v1064_v63 }
 0xd11   :  { %v1066_v55 = vsub.f32 %v1046_v58, %v1062_v29  ;;  %v1065_v4 = vsub.f32 %v1045_v59, %v1061_v2  ;;  %v1072_v5 = vsel %vm119_vm1, %v1068_v3, 0.0 }
 0xd12   :  { %1073 = vadd.xlane.f32.xlu0 %v1072_v5  ;;  %v1059_v6 = vpop.xlane.xlu1 %1058 }
 0xd13   :  { %v1063_v56 = vmul.f32 0.03125, %v1059_v6  ;;  %v1070_v8 = vmul.f32 %v1066_v55, %v1066_v55  ;;  %v1069_v10 = vmul.f32 %v1065_v4, %v1065_v4 }
 0xd15   :  { %v1067_v11 = vsub.f32 %v1047_v61, %v1063_v56  ;;  %v1078_v13 = vsel %vm119_vm1, %v1070_v8, 0.0  ;;  %v1075_v22 = vsel %vm119_vm1, %v1069_v10, 0.0 }
 0xd16   :  { %1079 = vadd.xlane.f32.xlu0 %v1078_v13  ;;  %1076 = vadd.xlane.f32.xlu1 %v1075_v22 }
 0xd17   :  { %v1071_v14 = vmul.f32 %v1067_v11, %v1067_v11 }
 0xd19   :  { %v1081_v16 = vsel %vm119_vm1, %v1071_v14, 0.0  ;;  %v2616_v14 = vld [vmem:[%s3324_s1 + $0x90] sm:$0xff]  }
 0xd1a   :  { %1082 = vadd.xlane.f32.xlu1 %v1081_v16  ;;  %2476 = vmatprep.subr.bf16.mxu0 %v2616_v14  ;;  %v2617_v16 = vld [vmem:[%s3324_s1 + $0x88] sm:$0xff]  }
 0xd1b   :  { %2477 = vmatpush3.bf16.msra.mxu0 %v2616_v14 }
 0xd1c   :  { %2478 = vmatprep.subr.bf16.mxu0 %v2617_v16 }
 0xd1f   :  { %2479 = vmatpush3.bf16.msra.mxu0 %v2617_v16  ;;  %v1277_v16 = vld [vmem:[%s3325_s2 + $0x68] sm:$0xff] }
 0xd9b   :  { %v1074_v20 = vpop.xlane.xlu0 %1073 }
 0xd9c   :  { %v1084_v17 = vmul.f32 0.03125, %v1074_v20 }
 0xd9e   :  { %v1088_v18 = vadd.f32 1e-05, %v1084_v17 }
 0xd9f   :  { %v1080_v19 = vpop.xlane.xlu0 %1079  ;;  %v1077_v21 = vpop.xlane.xlu1 %1076 }
 0xda0   :  { %2688 = vrsqrt.f32 %v1088_v18  ;;  %v1086_v23 = vmul.f32 0.03125, %v1080_v19  ;;  %v1085_v24 = vmul.f32 0.03125, %v1077_v21 }
 0xda2   :  { %v1090_v25 = vadd.f32 1e-05, %v1086_v23  ;;  %v1089_v26 = vadd.f32 1e-05, %v1085_v24 }
 0xda3   :  { %v1083_v31 = vpop.xlane.xlu1 %1082 }
 0xda4   :  { %2690 = vrsqrt.f32 %v1090_v25  ;;  %v1087_v32 = vmul.f32 0.03125, %v1083_v31 }
 0xda5   :  { %2692 = vrsqrt.f32 %v1089_v26 }
 0xda6   :  { %v1091_v33 = vadd.f32 1e-05, %v1087_v32 }
 0xda8   :  { %2694 = vrsqrt.f32 %v1091_v33 }
 0xdad   :  { %v2689_v34 = vpop.eup %2688 }
 0xdae   :  { %v1096_v36 = vmul.f32 %v2689_v34, %v1064_v63 }
 0xdb0   :  { %v1105_v38 = vmul.f32 %v2260_v35, %v1096_v36  ;;  %v2262_v36 = vld [vmem:[%s3325_s2 + $0x8b] ss:$0 sm:$0xff] }
 0xdb1   :  { %v2691_v39 = vpop.eup %2690 }
 0xdb2   :  { %v2693_v41 = vpop.eup %2692  ;;  %v1114_v42 = vadd.f32 %v2261_v37, %v1105_v38  ;;  %v1098_v43 = vmul.f32 %v2691_v39, %v1066_v55 }
 0xdb3   :  { %v1097_v44 = vmul.f32 %v2693_v41, %v1065_v4 }
 0xdb4   :  { %v3074_v45 = vadd.f32 %v1118_v40, %v1114_v42  ;;  %v1107_v46 = vmul.f32 %v2260_v35, %v1098_v43  ;;  %v2263_v42 = vld [vmem:[%s3325_s2 + $0x8c] ss:$0 sm:$0xff] }
 0xdb5   :  { %v2695_v47 = vpop.eup %2694  ;;  %v1106_v30 = vmul.f32 %v2260_v35, %v1097_v44 }
 0xdb6   :  { %v1126_v48 = vsel %vm119_vm1, %v3074_v45, 0.0  ;;  %v1116_v49 = vadd.f32 %v2261_v37, %v1107_v46  ;;  %v1099_v52 = vmul.f32 %v2695_v47, %v1067_v11 }
 0xdb7   :  { %1127 = vadd.xlane.f32.xlu0 %v1126_v48  ;;  %v1115_v27 = vadd.f32 %v2261_v37, %v1106_v30 }
 0xdb8   :  { %v3084_v53 = vadd.f32 %v1120_v28, %v1116_v49  ;;  %v1108_v54 = vmul.f32 %v2260_v35, %v1099_v52 }
 0xdb9   :  { %v3086_v9 = vadd.f32 %v1119_v50, %v1115_v27 }
 0xdba   :  { %v1132_v7 = vsel %vm119_vm1, %v3084_v53, 0.0  ;;  %v1117_v58 = vadd.f32 %v2261_v37, %v1108_v54 }
 0xdbb   :  { %1133 = vadd.xlane.f32.xlu0 %v1132_v7  ;;  %v1129_v59 = vsel %vm119_vm1, %v3086_v9, 0.0 }
 0xdbc   :  { %1130 = vadd.xlane.f32.xlu1 %v1129_v59  ;;  %v3095_v15 = vadd.f32 %v1121_v57, %v1117_v58  ;;  %v2264_v57 = vld [vmem:[%s3325_s2 + $0x8d] ss:$0 sm:$0xff] }
 0xdbe   :  { %v1135_v60 = vsel %vm119_vm1, %v3095_v15, 0.0 }
 0xdc0   :  { %1136 = vadd.xlane.f32.xlu1 %v1135_v60 }
 0xe40   :  { %v1128_v61 = vpop.xlane.xlu0 %1127 }
 0xe41   :  { %v1138_v51 = vmul.f32 0.03125, %v1128_v61 }
 0xe43   :  { %v1142_v12 = vsub.f32 %v3074_v45, %v1138_v51 }
 0xe44   :  { %v1134_v62 = vpop.xlane.xlu0 %1133 }
 0xe45   :  { %v1140_v63 = vmul.f32 0.03125, %v1134_v62  ;;  %v1131_v0 = vpop.xlane.xlu1 %1130  ;;  %v1146_v1 = vmul.f32 %v1142_v12, %v1142_v12 }
 0xe46   :  { %v1139_v29 = vmul.f32 0.03125, %v1131_v0 }
 0xe47   :  { %v1144_v2 = vsub.f32 %v3084_v53, %v1140_v63  ;;  %v1150_v3 = vsel %vm119_vm1, %v1146_v1, 0.0 }
 0xe48   :  { %v1143_v55 = vsub.f32 %v3086_v9, %v1139_v29  ;;  %1151 = vadd.xlane.f32.xlu0 %v1150_v3 }
 0xe49   :  { %v1137_v4 = vpop.xlane.xlu1 %1136  ;;  %v1148_v5 = vmul.f32 %v1144_v2, %v1144_v2 }
 0xe4a   :  { %v1141_v6 = vmul.f32 0.03125, %v1137_v4  ;;  %v1147_v56 = vmul.f32 %v1143_v55, %v1143_v55 }
 0xe4b   :  { %v1156_v8 = vsel %vm119_vm1, %v1148_v5, 0.0 }
 0xe4c   :  { %v1145_v10 = vsub.f32 %v3095_v15, %v1141_v6  ;;  %1157 = vadd.xlane.f32.xlu0 %v1156_v8  ;;  %v1153_v11 = vsel %vm119_vm1, %v1147_v56, 0.0 }
 0xe4d   :  { %1154 = vadd.xlane.f32.xlu1 %v1153_v11  ;;  %v1278_v11 = vld [vmem:[%s3325_s2 + $0x70] sm:$0xff] }
 0xe4e   :  { %v1149_v13 = vmul.f32 %v1145_v10, %v1145_v10 }
 0xe50   :  { %v1159_v22 = vsel %vm119_vm1, %v1149_v13, 0.0 }
 0xe51   :  { %1160 = vadd.xlane.f32.xlu1 %v1159_v22 }
 0xed1   :  { %v1152_v20 = vpop.xlane.xlu0 %1151 }
 0xed2   :  { %v1162_v17 = vmul.f32 0.03125, %v1152_v20 }
 0xed4   :  { %v1166_v18 = vadd.f32 1e-05, %v1162_v17 }
 0xed5   :  { %v1158_v19 = vpop.xlane.xlu0 %1157 }
 0xed6   :  { %2696 = vrsqrt.f32 %v1166_v18  ;;  %v1164_v21 = vmul.f32 0.03125, %v1158_v19  ;;  %v1155_v23 = vpop.xlane.xlu1 %1154  ;;  %v1279_v18 = vld [vmem:[%s3325_s2 + $0x78] sm:$0xff] }
 0xed7   :  { %v1163_v24 = vmul.f32 0.03125, %v1155_v23 }
 0xed8   :  { %v1168_v25 = vadd.f32 1e-05, %v1164_v21 }
 0xed9   :  { %v1167_v26 = vadd.f32 1e-05, %v1163_v24 }
 0xeda   :  { %2698 = vrsqrt.f32 %v1168_v25  ;;  %v1161_v31 = vpop.xlane.xlu1 %1160 }
 0xedb   :  { %2700 = vrsqrt.f32 %v1167_v26  ;;  %v1165_v32 = vmul.f32 0.03125, %v1161_v31 }
 0xedd   :  { %v1169_v33 = vadd.f32 1e-05, %v1165_v32 }
 0xedf   :  { %2702 = vrsqrt.f32 %v1169_v33 }
 0xee3   :  { %v2697_v34 = vpop.eup %2696 }
 0xee4   :  { %v1174_v35 = vmul.f32 %v2697_v34, %v1142_v12 }
 0xee6   :  { %v1183_v41 = vmul.f32 %v2262_v36, %v1174_v35 }
 0xee7   :  { %v2699_v37 = vpop.eup %2698 }
 0xee8   :  { %v2701_v38 = vpop.eup %2700  ;;  %v1176_v39 = vmul.f32 %v2699_v37, %v1144_v2  ;;  %v1192_v47 = vadd.f32 %v2263_v42, %v1183_v41 }
 0xee9   :  { %v1175_v40 = vmul.f32 %v2701_v38, %v1143_v55 }
 0xeea   :  { %v1185_v30 = vmul.f32 %v2262_v36, %v1176_v39 }
 0xeeb   :  { %v1184_v43 = vmul.f32 %v2262_v36, %v1175_v40 }
 0xeec   :  { %v2703_v44 = vpop.eup %2702  ;;  %v1194_v50 = vadd.f32 %v2263_v42, %v1185_v30 }
 0xeed   :  { %v1177_v46 = vmul.f32 %v2703_v44, %v1145_v10  ;;  %v1193_v28 = vadd.f32 %v2263_v42, %v1184_v43  ;;  %v1276_v10 = vld [vmem:[%s3325_s2 + $0x60] sm:$0xff] }
 0xeef   :  { %v1196_v48 = vpack.c.bf16 %v1193_v28, %v1192_v47  ;;  %v1186_v49 = vmul.f32 %v2262_v36, %v1177_v46 }
 0xef1   :  { %2480 = vmatprep.mubr.msk.bf16.mxu0 %vm119_vm1, %v1196_v48  ;;  %v1195_v52 = vadd.f32 %v2263_v42, %v1186_v49 }
 0xef3   :  { %v1197_v27 = vpack.c.bf16 %v1195_v52, %v1194_v50 }
 0xef5   :  { %2481 = vmatmul.mubr.msk.bf16.vlgmr.msra.gmra.mxu0 %vm119_vm1, %v1197_v27 }
 0xfb5   :  { %v2482_v54 = vpop.f32.mrf.mxu0 }
 0xfb6   :  { %v1268_v59 = vadd.f32 %v2482_v54, %v2264_v57 }
 0xfb7   :  { %v1259_v7 = vpop.f32.mrf.mxu0 }
 0xfb8   :  { %v1260_v51 = vadd.f32 %v2264_v57, %v1259_v7 }
 0xfb9   :  { %v2483_v58 = vpop.f32.mrf.mxu0 }
 0xfba   :  { %v1271_v60 = vadd.f32 %v2483_v58, %v2264_v57 }
 0xfbb   :  { %v1262_v61 = vpop.f32.mrf.mxu0 }
 0xfbc   :  { %v3124_v12 = vpack.c.bf16 %v1271_v60, %v1268_v59  ;;  %v1263_v62 = vadd.f32 %v2264_v57, %v1262_v61 }
 0xfbe   :  { %v3126_v63 = vpack.c.bf16 %v1263_v62, %v1260_v51  ;;  %1284 = vrot.lane.b32.xlu0 %v3124_v12, %s2782_s6 }
 0xfc0   :  { %1282 = vrot.lane.b32.xlu1 %v3126_v63, %s2782_s6  ;;  %2488 = vmatprep.mubr.msk.bf16.mxu0 %vm281_vm2, %v3126_v63 }
 0xfc2   :  { %1454 = vrot.lane.b32.xlu0 %v3126_v63, %s2785_s17 }
 0xfc4   :  { %1460 = vrot.lane.b32.xlu1 %v3124_v12, %s2784_s16 }
 0xfc8   :  { %1458 = vrot.lane.b32.xlu1 %v3126_v63, %s2784_s16 }
 0xfcc   :  { %1456 = vrot.lane.b32.xlu1 %v3124_v12, %s2785_s17 }
0x1030   :  { %v1285_v0 = vpop.permute.xlu0 %1284 }
0x1031   :  { %v1296_v1 = vsel %vm281_vm2, %v1285_v0, 0  ;;  %2564 = vmatprep.subr.msk.bf16.mxu0 %vm281_vm2, %v1285_v0 }
0x1032   :  { %2485 = vmatpush3.bf16.xpose.msra.mxu0 %v1296_v1  ;;  %v1283_v29 = vpop.permute.xlu1 %1282 }
0x1033   :  { %2565 = vmatprep.subr.msk.bf16.mxu0 %vm281_vm2, %v1283_v29  ;;  %v1293_v4 = vsel %vm281_vm2, %v1283_v29, 0 }
0x1034   :  { %v1455_v2 = vpop.permute.xlu0 %1454 }
0x1035   :  { %2504 = vmatprep.mubr.msk.bf16.mxu1 %vm281_vm2, %v1455_v2 }
0x1036   :  { %v1461_v3 = vpop.permute.xlu1 %1460 }
0x1037   :  { %v1472_v55 = vsel %vm281_vm2, %v1461_v3, 0  ;;  %2566 = vmatprep.subr.msk.bf16.mxu1 %vm281_vm2, %v1461_v3 }
0x1038   :  { %2501 = vmatpush3.bf16.xpose.msra.mxu1 %v1472_v55 }
0x103a   :  { %2487 = vmatpush3.bf16.xpose.msra.mxu0 %v1293_v4  ;;  %v1459_v5 = vpop.permute.xlu1 %1458 }
0x103b   :  { %2567 = vmatprep.subr.msk.bf16.mxu1 %vm281_vm2, %v1459_v5  ;;  %v1469_v6 = vsel %vm281_vm2, %v1459_v5, 0 }
0x103e   :  { %v1457_v56 = vpop.permute.xlu1 %1456 }
0x1040   :  { %2503 = vmatpush3.bf16.xpose.msra.mxu1 %v1469_v6 }
0x1041   :  { %2489 = vmatmul.mubr.msk.bf16.vlgmr.msra.gmra.mxu0 %vm281_vm2, %v3124_v12 }
0x1047   :  { %2505 = vmatmul.mubr.msk.bf16.vlgmr.msra.gmra.mxu1 %vm281_vm2, %v1457_v56 }
0x1101   :  { %v2490_v8 = vpop.f32.mrf.mxu0 }
0x1102   :  { %v1341_v20 = vadd.f32 %v2490_v8, %v1278_v11 }
0x1103   :  { %v1332_v13 = vpop.f32.mrf.mxu0 }
0x1104   :  { %v1333_v22 = vadd.f32 %v1332_v13, %v1276_v10  ;;  %v1353_v31 = vsel %vm119_vm1, %v1341_v20, -inf }
0x1105   :  { %v2491_v14 = vpop.f32.mrf.mxu0 }
0x1106   :  { %v1347_v17 = vsel %vm119_vm1, %v1333_v22, -inf  ;;  %v1344_v25 = vadd.f32 %v2491_v14, %v1279_v18 }
0x1107   :  { %v1335_v19 = vpop.f32.mrf.mxu0  ;;  %v2506_v21 = vpop.f32.mrf.mxu1  ;;  %1348 = vmax.xlane.f32.xlu0 %v1347_v17 }
0x1108   :  { %v1336_v23 = vadd.f32 %v1335_v19, %v1277_v16  ;;  %v1356_v36 = vsel %vm119_vm1, %v1344_v25, -inf  ;;  %v1517_v39 = vadd.f32 %v2506_v21, %v1278_v11 }
0x1109   :  { %v1508_v24 = vpop.f32.mrf.mxu1 }
0x110a   :  { %v1350_v26 = vsel %vm119_vm1, %v1336_v23, -inf  ;;  %v1509_v34 = vadd.f32 %v1508_v24, %v1276_v10  ;;  %v1529_v42 = vsel %vm119_vm1, %v1517_v39, -inf }
0x110b   :  { %v2507_v32 = vpop.f32.mrf.mxu1  ;;  %1351 = vmax.xlane.f32.xlu1 %v1350_v26  ;;  %1354 = vmax.xlane.f32.xlu0 %v1353_v31 }
0x110c   :  { %v1520_v37 = vadd.f32 %v2507_v32, %v1279_v18  ;;  %v1523_v40 = vsel %vm119_vm1, %v1509_v34, -inf }
0x110d   :  { %v1511_v33 = vpop.f32.mrf.mxu1 }
0x110e   :  { %v1512_v35 = vadd.f32 %v1511_v33, %v1277_v16  ;;  %v1532_v41 = vsel %vm119_vm1, %v1520_v37, -inf }
0x110f   :  { %1357 = vmax.xlane.f32.xlu0 %v1356_v36 }
0x1110   :  { %v1526_v38 = vsel %vm119_vm1, %v1512_v35, -inf }
0x1111   :  { %1527 = vmax.xlane.f32.xlu1 %v1526_v38 }
0x1113   :  { %1524 = vmax.xlane.f32.xlu0 %v1523_v40 }
0x1115   :  { %1533 = vmax.xlane.f32.xlu1 %v1532_v41 }
0x1117   :  { %1530 = vmax.xlane.f32.xlu0 %v1529_v42 }
0x1126   :  { %1393 = vrot.lane.b32.xlu1 %v3126_v63, %s2783_s15 }
0x112a   :  { %1571 = vrot.lane.b32.xlu1 %v3124_v12, %s2786_s25 }
0x1190   :  { %v1349_v43 = vpop.xlane.xlu0 %1348 }
0x1191   :  { %v1359_v57 = vsub.f32 %v1333_v22, %v1349_v43 }
0x1193   :  { %v1363_v62 = vmul.f32 1.442695, %v1359_v57  ;;  %v2618_v57 = vld [vmem:[%s3324_s1 + $0xa0] sm:$0xff]  }
0x1194   :  { %v1355_v44 = vpop.xlane.xlu0 %1354  ;;  %v1352_v47 = vpop.xlane.xlu1 %1351 }
0x1195   :  { %v1361_v46 = vsub.f32 %v1341_v20, %v1355_v44  ;;  %v1360_v52 = vsub.f32 %v1336_v23, %v1352_v47 }
0x1197   :  { %v1367_v28 = vmul.f32 1.442695, %v1361_v46  ;;  %v1365_v58 = vmul.f32 1.442695, %v1360_v52 }
0x1198   :  { %v1358_v30 = vpop.xlane.xlu0 %1357 }
0x1199   :  { %v1362_v48 = vsub.f32 %v1344_v25, %v1358_v30  ;;  %2704 = vpow2.f32 %v1367_v28 }
0x119a   :  { %v1528_v49 = vpop.xlane.xlu1 %1527 }
0x119b   :  { %v1369_v50 = vmul.f32 1.442695, %v1362_v48  ;;  %v1536_v60 = vsub.f32 %v1512_v35, %v1528_v49 }
0x119c   :  { %v1525_v27 = vpop.xlane.xlu0 %1524 }
0x119d   :  { %2706 = vpow2.f32 %v1369_v50  ;;  %v1535_v0 = vsub.f32 %v1509_v34, %v1525_v27  ;;  %v1541_v29 = vmul.f32 1.442695, %v1536_v60  ;;  %v2619_v60 = vld [vmem:[%s3324_s1 + $0x98] sm:$0xff]  }
0x119e   :  { %v1534_v54 = vpop.xlane.xlu1 %1533 }
0x119f   :  { %v1538_v7 = vsub.f32 %v1520_v37, %v1534_v54  ;;  %v1539_v3 = vmul.f32 1.442695, %v1535_v0 }
0x11a0   :  { %v1531_v59 = vpop.xlane.xlu0 %1530 }
0x11a1   :  { %v1545_v61 = vmul.f32 1.442695, %v1538_v7  ;;  %v1537_v51 = vsub.f32 %v1517_v39, %v1531_v59 }
0x11a2   :  { %v1394_v19 = vpop.permute.xlu1 %1393 }
0x11a3   :  { %2708 = vpow2.f32 %v1545_v61  ;;  %v1543_v1 = vmul.f32 1.442695, %v1537_v51 }
0x11a4   :  { %2710 = vpow2.f32 %v1365_v58 }
0x11a5   :  { %2712 = vpow2.f32 %v1543_v1 }
0x11a6   :  { %v2705_v2 = vpop.eup %2704  ;;  %2714 = vpow2.f32 %v1363_v62  ;;  %v1572_v21 = vpop.permute.xlu1 %1571 }
0x11a7   :  { %v1377_v55 = vsel %vm119_vm1, %v2705_v2, 0.0  ;;  %2716 = vpow2.f32 %v1541_v29 }
0x11a8   :  { %1378 = vadd.xlane.f32.xlu0 %v1377_v55  ;;  %2718 = vpow2.f32 %v1539_v3 }
0x11aa   :  { %v2707_v4 = vpop.eup %2706 }
0x11ab   :  { %v1380_v5 = vsel %vm119_vm1, %v2707_v4, 0.0 }
0x11ac   :  { %1381 = vadd.xlane.f32.xlu1 %v1380_v5 }
0x11b0   :  { %v3180_v6 = vpop.eup %2708 }
0x11b1   :  { %v2711_v56 = vpop.eup %2710  ;;  %v1556_v8 = vsel %vm119_vm1, %v3180_v6, 0.0 }
0x11b2   :  { %v3184_v10 = vpop.eup %2712  ;;  %1557 = vadd.xlane.f32.xlu1 %v1556_v8  ;;  %v1374_v22 = vsel %vm119_vm1, %v2711_v56, 0.0 }
0x11b3   :  { %v1553_v11 = vsel %vm119_vm1, %v3184_v10, 0.0  ;;  %v2715_v13 = vpop.eup %2714 }
0x11b4   :  { %1554 = vadd.xlane.f32.xlu0 %v1553_v11  ;;  %v2717_v14 = vpop.eup %2716  ;;  %v1371_v16 = vsel %vm119_vm1, %v2715_v13, 0.0 }
0x11b5   :  { %v2719_v20 = vpop.eup %2718  ;;  %v1550_v17 = vsel %vm119_vm1, %v2717_v14, 0.0 }
0x11b6   :  { %1375 = vadd.xlane.f32.xlu1 %v1374_v22  ;;  %v1547_v18 = vsel %vm119_vm1, %v2719_v20, 0.0 }
0x11b8   :  { %1372 = vadd.xlane.f32.xlu0 %v1371_v16 }
0x11ba   :  { %1551 = vadd.xlane.f32.xlu1 %v1550_v17 }
0x11bc   :  { %1548 = vadd.xlane.f32.xlu0 %v1547_v18 }
0x11cb   :  { %1569 = vrot.lane.b32.xlu1 %v3126_v63, %s2786_s25 }
0x11d2   :  { %1395 = vrot.lane.b32.xlu0 %v3124_v12, %s2783_s15 }
0x1231   :  { %v1379_v24 = vpop.xlane.xlu0 %1378 }
0x1235   :  { %v1382_v23 = vpop.xlane.xlu1 %1381 }
0x1236   :  { %2720 = vrcp.f32 %v1382_v23 }
0x123b   :  { %v1558_v25 = vpop.xlane.xlu1 %1557 }
0x123d   :  { %v1555_v26 = vpop.xlane.xlu0 %1554 }
0x123f   :  { %v1376_v31 = vpop.xlane.xlu1 %1375 }
0x1240   :  { %2722 = vrcp.f32 %v1376_v31 }
0x1241   :  { %2724 = vrcp.f32 %v1379_v24  ;;  %v1373_v32 = vpop.xlane.xlu0 %1372 }
0x1242   :  { %2726 = vrcp.f32 %v1373_v32 }
0x1243   :  { %v1552_v33 = vpop.xlane.xlu1 %1551  ;;  %v2721_v12 = vpop.eup %2720 }
0x1244   :  { %2728 = vrcp.f32 %v1552_v33  ;;  %v1390_v38 = vmul.f32 %v2721_v12, %v2707_v4 }
0x1245   :  { %v1549_v34 = vpop.xlane.xlu0 %1548 }
0x1246   :  { %2730 = vrcp.f32 %v1549_v34 }
0x1247   :  { %2732 = vrcp.f32 %v1555_v26  ;;  %v1570_v49 = vpop.permute.xlu1 %1569 }
0x1248   :  { %2734 = vrcp.f32 %v1558_v25 }
0x1249   :  { %v1396_v63 = vpop.permute.xlu0 %1395 }
0x124a   :  { %2492 = vmatprep.subr.bf16.mxu0 %v1396_v63 }
0x124b   :  { %2493 = vmatpush3.bf16.msra.mxu0 %v1396_v63 }
0x124c   :  { %2494 = vmatprep.subr.bf16.mxu0 %v1394_v19 }
0x124d   :  { %v2723_v35 = vpop.eup %2722 }
0x124e   :  { %v2725_v36 = vpop.eup %2724  ;;  %v1388_v40 = vmul.f32 %v2723_v35, %v2711_v56 }
0x124f   :  { %v2727_v37 = vpop.eup %2726  ;;  %2495 = vmatpush3.bf16.msra.mxu0 %v1394_v19  ;;  %v1389_v42 = vmul.f32 %v2725_v36, %v2705_v2 }
0x1250   :  { %2508 = vmatprep.subr.bf16.mxu0 %v1572_v21  ;;  %v1387_v39 = vmul.f32 %v2727_v37, %v2715_v13 }
0x1251   :  { %v2729_v41 = vpop.eup %2728  ;;  %v1392_v46 = vpack.c.bf16 %v1390_v38, %v1389_v42 }
0x1252   :  { %v1391_v43 = vpack.c.bf16 %v1388_v40, %v1387_v39  ;;  %v1564_v30 = vmul.f32 %v2729_v41, %v2717_v14 }
0x1253   :  { %v2731_v44 = vpop.eup %2730 }
0x1254   :  { %v2733_v47 = vpop.eup %2732  ;;  %2496 = vmatprep.mubr.msk.bf16.mxu0 %vm119_vm1, %v1391_v43  ;;  %v1563_v28 = vmul.f32 %v2731_v44, %v2719_v20  ;;  %v2281_v20 = vld [vmem:[%s3325_s2 + $0x8e] ss:$0 sm:$0xff] }
0x1255   :  { %2497 = vmatmul.mubr.msk.bf16.vlgmr.msra.gmra.mxu0 %vm119_vm1, %v1392_v46  ;;  %v2735_v48 = vpop.eup %2734  ;;  %v1565_v52 = vmul.f32 %v2733_v47, %v3184_v10 }
0x1256   :  { %2509 = vmatpush3.bf16.msra.mxu0 %v1572_v21  ;;  %v1567_v50 = vpack.c.bf16 %v1564_v30, %v1563_v28  ;;  %v1566_v27 = vmul.f32 %v2735_v48, %v3180_v6 }
0x1257   :  { %2510 = vmatprep.subr.bf16.mxu0 %v1570_v49 }
0x1258   :  { %2512 = vmatprep.mubr.msk.bf16.mxu0 %vm119_vm1, %v1567_v50  ;;  %v1568_v54 = vpack.c.bf16 %v1566_v27, %v1565_v52  ;;  %v2620_v52 = vld [vmem:[%s3324_s1 + $0xb0] sm:$0xff]   ;;  %v2621_v27 = vld [vmem:[%s3324_s1 + $0xa8] sm:$0xff]  }
0x1259   :  { %2524 = vmatprep.subr.bf16.mxu1 %v2620_v52 }
0x125a   :  { %2511 = vmatpush3.bf16.msra.mxu0 %v1570_v49  ;;  %2525 = vmatpush3.bf16.msra.mxu1 %v2620_v52 }
0x125b   :  { %2516 = vmatprep.subr.bf16.mxu0 %v2618_v57  ;;  %2526 = vmatprep.subr.bf16.mxu1 %v2621_v27 }
0x125d   :  { %2513 = vmatmul.mubr.msk.bf16.vlgmr.msra.gmra.mxu0 %vm119_vm1, %v1568_v54 }
0x125e   :  { %2517 = vmatpush3.bf16.msra.mxu0 %v2618_v57  ;;  %2527 = vmatpush3.bf16.msra.mxu1 %v2621_v27 }
0x125f   :  { %2518 = vmatprep.subr.bf16.mxu0 %v2619_v60 }
0x1262   :  { %2519 = vmatpush3.bf16.msra.mxu0 %v2619_v60 }
0x1315   :  { %v2498_v7 = vpop.f32.mrf.mxu0 }
0x1317   :  { %v1439_v58 = vpop.f32.mrf.mxu0 }
0x1319   :  { %v2499_v59 = vpop.f32.mrf.mxu0 }
0x131b   :  { %v1442_v61 = vpop.f32.mrf.mxu0 }
0x131d   :  { %v2514_v51 = vpop.f32.mrf.mxu0 }
0x131f   :  { %v1615_v62 = vpop.f32.mrf.mxu0 }
0x1321   :  { %v2515_v0 = vpop.f32.mrf.mxu0 }
0x1322   :  { %v2592_v1 = vpack.i.bf16 %v2515_v0, %v2514_v51 }
0x1323   :  { %v1618_v29 = vpop.f32.mrf.mxu0 }
0x1324   :  { %v2587_v2 = vpack.i.bf16 %v1618_v29, %v1615_v62  ;;  %2593 = vrot.lane.b32.xlu1 %v2592_v1, %s2787_s30 }
0x1326   :  { %2588 = vrot.lane.b32.xlu0 %v2587_v2, %s2787_s30 }
0x1396   :  { %v2594_v3 = vpop.permute.xlu1 %2593 }
0x1397   :  { %v2596_v55 = vunpack.i.h.bf16 %v2594_v3  ;;  %v2595_v4 = vunpack.i.l.bf16 %v2594_v3 }
0x1398   :  { %v2589_v5 = vpop.permute.xlu0 %2588 }
0x1399   :  { %v2591_v6 = vunpack.i.h.bf16 %v2589_v5  ;;  %v2590_v56 = vunpack.i.l.bf16 %v2589_v5  ;;  %v1649_v8 = vsel %vm281_vm2, %v2499_v59, %v2596_v55  ;;  %v1648_v10 = vsel %vm281_vm2, %v2498_v7, %v2595_v4  ;;  %v2282_v55 = vld [vmem:[%s3325_s2 + $0x8f] ss:$0 sm:$0xff] }
0x139a   :  { %v1651_v14 = vpack.c.bf16 %v1649_v8, %v1648_v10  ;;  %v2283_v10 = vld [vmem:[%s3325_s2 + $0x90] ss:$0 sm:$0xff] }
0x139b   :  { %v1647_v11 = vsel %vm281_vm2, %v1442_v61, %v2591_v6  ;;  %v1646_v13 = vsel %vm281_vm2, %v1439_v58, %v2590_v56 }
0x139c   :  { %v1650_v22 = vpack.c.bf16 %v1647_v11, %v1646_v13 }
0x139e   :  { %2520 = vmatprep.mubr.msk.bf16.mxu0 %vm119_vm1, %v1650_v22 }
0x139f   :  { %2521 = vmatmul.mubr.msk.bf16.vlgmr.msra.gmra.mxu0 %vm119_vm1, %v1651_v14 }
0x145f   :  { %v2522_v16 = vpop.f32.mrf.mxu0 }
0x1460   :  { %v1730_v18 = vadd.f32 %v2522_v16, %v2281_v20 }
0x1461   :  { %v1708_v17 = vpop.f32.mrf.mxu0 }
0x1462   :  { %v1728_v19 = vadd.f32 %v2281_v20, %v1708_v17  ;;  %v3223_v25 = vadd.f32 %v1730_v18, %v3084_v53 }
0x1463   :  { %v2523_v21 = vpop.f32.mrf.mxu0 }
0x1464   :  { %v3220_v23 = vadd.f32 %v1728_v19, %v3074_v45  ;;  %v1731_v26 = vadd.f32 %v2523_v21, %v2281_v20  ;;  %v1742_v45 = vsel %vm119_vm1, %v3223_v25, 0.0 }
0x1465   :  { %v1711_v24 = vpop.f32.mrf.mxu0 }
0x1466   :  { %v1729_v31 = vadd.f32 %v2281_v20, %v1711_v24  ;;  %v1736_v32 = vsel %vm119_vm1, %v3220_v23, 0.0  ;;  %v3231_v34 = vadd.f32 %v1731_v26, %v3095_v15  ;;  %v2622_v26 = vld [vmem:[%s3324_s1 + $0xf0] sm:$0xff]  }
0x1467   :  { %1737 = vadd.xlane.f32.xlu0 %v1736_v32  ;;  %2532 = vmatprep.subr.bf16.mxu0 %v2622_v26  ;;  %v2624_v32 = vld [vmem:[%s3324_s1 + $0xe0] sm:$0xff]  }
0x1468   :  { %v3228_v33 = vadd.f32 %v1729_v31, %v3086_v9  ;;  %v1745_v53 = vsel %vm119_vm1, %v3231_v34, 0.0  ;;  %2533 = vmatpush3.bf16.msra.mxu0 %v2622_v26  ;;  %v2623_v31 = vld [vmem:[%s3324_s1 + $0xe8] sm:$0xff]  }
0x1469   :  { %2534 = vmatprep.subr.bf16.mxu0 %v2623_v31 }
0x146a   :  { %v1739_v63 = vsel %vm119_vm1, %v3228_v33, 0.0 }
0x146b   :  { %1743 = vadd.xlane.f32.xlu0 %v1742_v45  ;;  %1740 = vadd.xlane.f32.xlu1 %v1739_v63  ;;  %v2625_v45 = vld [vmem:[%s3324_s1 + $0xd8] sm:$0xff]   ;;  %v2626_v63 = vld [vmem:[%s3324_s1 + $0xd0] sm:$0xff]  }
0x146c   :  { %2535 = vmatpush3.bf16.msra.mxu0 %v2623_v31 }
0x146d   :  { %2536 = vmatprep.subr.bf16.mxu0 %v2624_v32 }
0x146f   :  { %1746 = vadd.xlane.f32.xlu0 %v1745_v53  ;;  %v2627_v53 = vld [vmem:[%s3324_s1 + $0xc8] sm:$0xff]  }
0x1470   :  { %2537 = vmatpush3.bf16.msra.mxu0 %v2624_v32 }
0x1471   :  { %2538 = vmatprep.subr.bf16.mxu0 %v2625_v45 }
0x1474   :  { %2539 = vmatpush3.bf16.msra.mxu0 %v2625_v45 }
0x1475   :  { %2540 = vmatprep.subr.bf16.mxu0 %v2626_v63 }
0x1478   :  { %2541 = vmatpush3.bf16.msra.mxu0 %v2626_v63 }
0x1479   :  { %2542 = vmatprep.subr.bf16.mxu0 %v2627_v53 }
0x147c   :  { %2543 = vmatpush3.bf16.msra.mxu0 %v2627_v53 }
0x14f0   :  { %v1738_v12 = vpop.xlane.xlu0 %1737 }
0x14f1   :  { %v1748_v35 = vmul.f32 0.03125, %v1738_v12  ;;  %v2628_v12 = vld [vmem:[%s3324_s1 + $0xc0] sm:$0xff]  }
0x14f2   :  { %2544 = vmatprep.subr.bf16.mxu0 %v2628_v12 }
0x14f3   :  { %v1752_v9 = vsub.f32 %v3220_v23, %v1748_v35  ;;  %v2629_v35 = vld [vmem:[%s3324_s1 + $0xb8] sm:$0xff]   ;;  %2545 = vmatpush3.bf16.msra.mxu0 %v2628_v12 }
0x14f4   :  { %v1744_v36 = vpop.xlane.xlu0 %1743  ;;  %v1741_v37 = vpop.xlane.xlu1 %1740  ;;  %2546 = vmatprep.subr.bf16.mxu0 %v2629_v35 }
0x14f5   :  { %v1750_v15 = vmul.f32 0.03125, %v1744_v36  ;;  %v1749_v38 = vmul.f32 0.03125, %v1741_v37  ;;  %v1756_v39 = vmul.f32 %v1752_v9, %v1752_v9 }
0x14f7   :  { %v1754_v40 = vsub.f32 %v3223_v25, %v1750_v15  ;;  %v1753_v41 = vsub.f32 %v3228_v33, %v1749_v38  ;;  %v1760_v42 = vsel %vm119_vm1, %v1756_v39, 0.0  ;;  %2547 = vmatpush3.bf16.msra.mxu0 %v2629_v35 }
0x14f8   :  { %1761 = vadd.xlane.f32.xlu0 %v1760_v42  ;;  %v1747_v43 = vpop.xlane.xlu0 %1746 }
0x14f9   :  { %v1751_v44 = vmul.f32 0.03125, %v1747_v43  ;;  %v1758_v46 = vmul.f32 %v1754_v40, %v1754_v40  ;;  %v1757_v47 = vmul.f32 %v1753_v41, %v1753_v41 }
0x14fb   :  { %v1755_v28 = vsub.f32 %v3231_v34, %v1751_v44  ;;  %v1766_v30 = vsel %vm119_vm1, %v1758_v46, 0.0  ;;  %v1763_v48 = vsel %vm119_vm1, %v1757_v47, 0.0 }
0x14fc   :  { %1767 = vadd.xlane.f32.xlu0 %v1766_v30  ;;  %1764 = vadd.xlane.f32.xlu1 %v1763_v48 }
0x14fd   :  { %v1759_v49 = vmul.f32 %v1755_v28, %v1755_v28 }
0x14ff   :  { %v1769_v50 = vsel %vm119_vm1, %v1759_v49, 0.0 }
0x1500   :  { %1770 = vadd.xlane.f32.xlu1 %v1769_v50 }
0x1581   :  { %v1762_v54 = vpop.xlane.xlu0 %1761 }
0x1582   :  { %v1772_v57 = vmul.f32 0.03125, %v1762_v54 }
0x1584   :  { %v1776_v7 = vadd.f32 1e-05, %v1772_v57 }
0x1585   :  { %v1768_v58 = vpop.xlane.xlu0 %1767  ;;  %v1765_v59 = vpop.xlane.xlu1 %1764 }
0x1586   :  { %2736 = vrsqrt.f32 %v1776_v7  ;;  %v1774_v60 = vmul.f32 0.03125, %v1768_v58  ;;  %v1773_v61 = vmul.f32 0.03125, %v1765_v59 }
0x1588   :  { %v1778_v51 = vadd.f32 1e-05, %v1774_v60  ;;  %v1777_v62 = vadd.f32 1e-05, %v1773_v61 }
0x1589   :  { %v1771_v0 = vpop.xlane.xlu1 %1770 }
0x158a   :  { %2738 = vrsqrt.f32 %v1778_v51  ;;  %v1775_v1 = vmul.f32 0.03125, %v1771_v0 }
0x158b   :  { %2740 = vrsqrt.f32 %v1777_v62 }
0x158c   :  { %v1779_v29 = vadd.f32 1e-05, %v1775_v1 }
0x158e   :  { %2742 = vrsqrt.f32 %v1779_v29 }
0x1593   :  { %v2737_v2 = vpop.eup %2736 }
0x1594   :  { %v1784_v3 = vmul.f32 %v2737_v2, %v1752_v9  ;;  %v2284_v9 = vld [vmem:[%s3325_s2 + $0x91] ss:$0 sm:$0xff] }
0x1596   :  { %v1793_v8 = vmul.f32 %v2282_v55, %v1784_v3 }
0x1597   :  { %v2739_v4 = vpop.eup %2738 }
0x1598   :  { %v2741_v5 = vpop.eup %2740  ;;  %v1786_v6 = vmul.f32 %v2739_v4, %v1754_v40  ;;  %v1802_v16 = vadd.f32 %v2283_v10, %v1793_v8 }
0x1599   :  { %v1785_v56 = vmul.f32 %v2741_v5, %v1753_v41 }
0x159a   :  { %v1795_v14 = vmul.f32 %v2282_v55, %v1786_v6 }
0x159b   :  { %v2743_v11 = vpop.eup %2742  ;;  %v1794_v13 = vmul.f32 %v2282_v55, %v1785_v56 }
0x159c   :  { %v1787_v22 = vmul.f32 %v2743_v11, %v1755_v28  ;;  %v1804_v19 = vadd.f32 %v2283_v10, %v1795_v14 }
0x159d   :  { %v1803_v20 = vadd.f32 %v2283_v10, %v1794_v13 }
0x159e   :  { %v1796_v17 = vmul.f32 %v2282_v55, %v1787_v22 }
0x159f   :  { %v1806_v18 = vpack.c.bf16 %v1803_v20, %v1802_v16 }
0x15a0   :  { %v1805_v21 = vadd.f32 %v2283_v10, %v1796_v17 }
0x15a1   :  { %2528 = vmatprep.mubr.msk.bf16.mxu1 %vm119_vm1, %v1806_v18  ;;  %v2297_v18 = vld [vmem:[%s3325_s2 + $0x92] ss:$0 sm:$0xff] }
0x15a2   :  { %v1807_v24 = vpack.c.bf16 %v1805_v21, %v1804_v19 }
0x15a4   :  { %2529 = vmatmul.mubr.msk.bf16.vlgmr.msra.gmra.mxu1 %vm119_vm1, %v1807_v24 }
0x1664   :  { %v2530_v36 = vpop.f32.mrf.mxu1 }
0x1665   :  { %v1878_v37 = vadd.f32 %v2530_v36, %v2284_v9 }
0x1666   :  { %v1869_v15 = vpop.f32.mrf.mxu1 }
0x1667   :  { %v1886_v38 = vmul.f32 %v1878_v37, %v1878_v37  ;;  %v1870_v39 = vadd.f32 %v2284_v9, %v1869_v15 }
0x1668   :  { %v2531_v40 = vpop.f32.mrf.mxu1 }
0x1669   :  { %v1890_v41 = vmul.f32 %v1886_v38, %v1878_v37  ;;  %v1884_v42 = vmul.f32 %v1870_v39, %v1870_v39  ;;  %v1881_v43 = vadd.f32 %v2531_v40, %v2284_v9 }
0x166a   :  { %v1872_v44 = vpop.f32.mrf.mxu1 }
0x166b   :  { %v1894_v46 = vmul.f32 0.044715, %v1890_v41  ;;  %v1888_v47 = vmul.f32 %v1884_v42, %v1870_v39  ;;  %v1887_v28 = vmul.f32 %v1881_v43, %v1881_v43  ;;  %v1873_v30 = vadd.f32 %v2284_v9, %v1872_v44 }
0x166d   :  { %v1898_v48 = vadd.f32 %v1894_v46, %v1878_v37  ;;  %v1892_v49 = vmul.f32 0.044715, %v1888_v47  ;;  %v1891_v50 = vmul.f32 %v1887_v28, %v1881_v43  ;;  %v1885_v52 = vmul.f32 %v1873_v30, %v1873_v30 }
0x166f   :  { %v1902_v27 = vmul.f32 0.7978846, %v1898_v48  ;;  %v1896_v54 = vadd.f32 %v1892_v49, %v1870_v39  ;;  %v1895_v57 = vmul.f32 0.044715, %v1891_v50  ;;  %v1889_v7 = vmul.f32 %v1885_v52, %v1873_v30 }
0x1671   :  { %v1900_v58 = vmul.f32 0.7978846, %v1896_v54  ;;  %v1899_v59 = vadd.f32 %v1895_v57, %v1881_v43  ;;  %v1893_v60 = vmul.f32 0.044715, %v1889_v7  ;;  %2744 = vtanh.f32 %v1902_v27  ;;  %v2630_v54 = vld [vmem:[%s3324_s1 + $0x100] sm:$0xff]   ;;  %v2631_v57 = vld [vmem:[%s3324_s1 + $0xf8] sm:$0xff]  }
0x1672   :  { %2552 = vmatprep.subr.bf16.mxu1 %v2630_v54 }
0x1673   :  { %2746 = vtanh.f32 %v1900_v58  ;;  %v1903_v61 = vmul.f32 0.7978846, %v1899_v59  ;;  %v1897_v51 = vadd.f32 %v1893_v60, %v1873_v30  ;;  %2553 = vmatpush3.bf16.msra.mxu1 %v2630_v54 }
0x1674   :  { %2554 = vmatprep.subr.bf16.mxu1 %v2631_v57 }
0x1675   :  { %2748 = vtanh.f32 %v1903_v61  ;;  %v1901_v62 = vmul.f32 0.7978846, %v1897_v51 }
0x1677   :  { %2750 = vtanh.f32 %v1901_v62  ;;  %2555 = vmatpush3.bf16.msra.mxu1 %v2631_v57 }
0x167e   :  { %v2745_v0 = vpop.eup %2744 }
0x167f   :  { %v1910_v3 = vadd.f32 1.0, %v2745_v0 }
0x1680   :  { %v2747_v1 = vpop.eup %2746 }
0x1681   :  { %v1908_v29 = vadd.f32 1.0, %v2747_v1  ;;  %v1914_v8 = vmul.f32 0.5, %v1910_v3 }
0x1682   :  { %v2749_v2 = vpop.eup %2748 }
0x1683   :  { %v1911_v55 = vadd.f32 1.0, %v2749_v2  ;;  %v1912_v56 = vmul.f32 0.5, %v1908_v29  ;;  %v1918_v14 = vmul.f32 %v1914_v8, %v1878_v37 }
0x1684   :  { %v2751_v4 = vpop.eup %2750 }
0x1685   :  { %v1915_v5 = vmul.f32 0.5, %v1911_v55  ;;  %v1909_v6 = vadd.f32 1.0, %v2751_v4  ;;  %v1916_v13 = vmul.f32 %v1912_v56, %v1870_v39 }
0x1687   :  { %v1913_v10 = vmul.f32 0.5, %v1909_v6  ;;  %v1919_v11 = vmul.f32 %v1915_v5, %v1881_v43  ;;  %v2298_v5 = vld [vmem:[%s3325_s2 + $0x93] ss:$0 sm:$0xff] }
0x1689   :  { %v1917_v22 = vmul.f32 %v1913_v10, %v1873_v30  ;;  %v1921_v20 = vpack.c.bf16 %v1919_v11, %v1918_v14 }
0x168b   :  { %v1920_v16 = vpack.c.bf16 %v1917_v22, %v1916_v13  ;;  %v2299_v13 = vld [vmem:[%s3325_s2 + $0x94] ss:$0 sm:$0xff] }
0x168d   :  { %2548 = vmatprep.mubr.bf16.mxu0 %v1920_v16 }
0x168e   :  { %2549 = vmatmul.mubr.bf16.vlgmr.msra.gmra.mxu0 %v1921_v20 }
0x174e   :  { %v2550_v17 = vpop.f32.mrf.mxu0 }
0x174f   :  { %v2042_v21 = vadd.f32 %v2550_v17, %v2297_v18 }
0x1750   :  { %v2020_v19 = vpop.f32.mrf.mxu0 }
0x1751   :  { %v2040_v24 = vadd.f32 %v2297_v18, %v2020_v19  ;;  %v2046_v45 = vadd.f32 %v2042_v21, %v3223_v25 }
0x1752   :  { %v2551_v26 = vpop.f32.mrf.mxu0 }
0x1753   :  { %v2044_v31 = vadd.f32 %v2040_v24, %v3220_v23  ;;  %v2043_v63 = vadd.f32 %v2551_v26, %v2297_v18  ;;  %v2054_v36 = vsel %vm119_vm1, %v2046_v45, 0.0 }
0x1754   :  { %v2023_v32 = vpop.f32.mrf.mxu0 }
0x1755   :  { %v2041_v53 = vadd.f32 %v2297_v18, %v2023_v32  ;;  %v2048_v12 = vsel %vm119_vm1, %v2044_v31, 0.0  ;;  %v2047_v9 = vadd.f32 %v2043_v63, %v3231_v34  ;;  %v2300_v32 = vld [vmem:[%s3325_s2 + $0x95] ss:$0 sm:$0xff] }
0x1756   :  { %2049 = vadd.xlane.f32.xlu0 %v2048_v12 }
0x1757   :  { %v2045_v35 = vadd.f32 %v2041_v53, %v3228_v33  ;;  %v2057_v23 = vsel %vm119_vm1, %v2047_v9, 0.0 }
0x1759   :  { %v2051_v37 = vsel %vm119_vm1, %v2045_v35, 0.0 }
0x175a   :  { %2055 = vadd.xlane.f32.xlu0 %v2054_v36  ;;  %2052 = vadd.xlane.f32.xlu1 %v2051_v37 }
0x175e   :  { %2058 = vadd.xlane.f32.xlu1 %v2057_v23 }
0x17df   :  { %v2050_v15 = vpop.xlane.xlu0 %2049 }
0x17e0   :  { %v2060_v25 = vmul.f32 0.03125, %v2050_v15 }
0x17e2   :  { %v2064_v38 = vsub.f32 %v2044_v31, %v2060_v25 }
0x17e3   :  { %v2056_v39 = vpop.xlane.xlu0 %2055  ;;  %v2053_v40 = vpop.xlane.xlu1 %2052 }
0x17e4   :  { %v2062_v41 = vmul.f32 0.03125, %v2056_v39  ;;  %v2061_v42 = vmul.f32 0.03125, %v2053_v40  ;;  %v2068_v43 = vmul.f32 %v2064_v38, %v2064_v38 }
0x17e6   :  { %v2066_v33 = vsub.f32 %v2046_v45, %v2062_v41  ;;  %v2065_v44 = vsub.f32 %v2045_v35, %v2061_v42  ;;  %v2072_v34 = vsel %vm119_vm1, %v2068_v43, 0.0 }
0x17e7   :  { %2073 = vadd.xlane.f32.xlu0 %v2072_v34  ;;  %v2059_v46 = vpop.xlane.xlu1 %2058 }
0x17e8   :  { %v2063_v47 = vmul.f32 0.03125, %v2059_v46  ;;  %v2070_v28 = vmul.f32 %v2066_v33, %v2066_v33  ;;  %v2069_v30 = vmul.f32 %v2065_v44, %v2065_v44 }
0x17ea   :  { %v2067_v48 = vsub.f32 %v2047_v9, %v2063_v47  ;;  %v2078_v49 = vsel %vm119_vm1, %v2070_v28, 0.0  ;;  %v2075_v50 = vsel %vm119_vm1, %v2069_v30, 0.0 }
0x17eb   :  { %2079 = vadd.xlane.f32.xlu0 %v2078_v49  ;;  %2076 = vadd.xlane.f32.xlu1 %v2075_v50 }
0x17ec   :  { %v2071_v52 = vmul.f32 %v2067_v48, %v2067_v48 }
0x17ee   :  { %v2081_v27 = vsel %vm119_vm1, %v2071_v52, 0.0 }
0x17ef   :  { %2082 = vadd.xlane.f32.xlu1 %v2081_v27 }
0x1870   :  { %v2074_v7 = vpop.xlane.xlu0 %2073 }
0x1871   :  { %v2084_v58 = vmul.f32 0.03125, %v2074_v7 }
0x1873   :  { %v2088_v59 = vadd.f32 1e-05, %v2084_v58 }
0x1874   :  { %v2080_v60 = vpop.xlane.xlu0 %2079  ;;  %v2077_v61 = vpop.xlane.xlu1 %2076 }
0x1875   :  { %2752 = vrsqrt.f32 %v2088_v59  ;;  %v2086_v51 = vmul.f32 0.03125, %v2080_v60  ;;  %v2085_v62 = vmul.f32 0.03125, %v2077_v61 }
0x1877   :  { %v2090_v0 = vadd.f32 1e-05, %v2086_v51  ;;  %v2089_v1 = vadd.f32 1e-05, %v2085_v62 }
0x1878   :  { %v2083_v29 = vpop.xlane.xlu1 %2082 }
0x1879   :  { %2754 = vrsqrt.f32 %v2090_v0  ;;  %v2087_v2 = vmul.f32 0.03125, %v2083_v29 }
0x187a   :  { %2756 = vrsqrt.f32 %v2089_v1 }
0x187b   :  { %v2091_v3 = vadd.f32 1e-05, %v2087_v2 }
0x187d   :  { %2758 = vrsqrt.f32 %v2091_v3 }
0x1882   :  { %v2753_v55 = vpop.eup %2752 }
0x1883   :  { %v2096_v4 = vmul.f32 %v2753_v55, %v2064_v38 }
0x1885   :  { %v2105_v11 = vmul.f32 %v2298_v5, %v2096_v4 }
0x1886   :  { %v2755_v6 = vpop.eup %2754 }
0x1887   :  { %v2757_v56 = vpop.eup %2756  ;;  %v2098_v8 = vmul.f32 %v2755_v6, %v2066_v33  ;;  %v2114_v17 = vadd.f32 %v2299_v13, %v2105_v11 }
0x1888   :  { %v2097_v10 = vmul.f32 %v2757_v56, %v2065_v44 }
0x1889   :  { %v2107_v20 = vmul.f32 %v2298_v5, %v2098_v8 }
0x188a   :  { %v2759_v22 = vpop.eup %2758  ;;  %v2106_v14 = vmul.f32 %v2298_v5, %v2097_v10 }
0x188b   :  { %v2099_v16 = vmul.f32 %v2759_v22, %v2067_v48  ;;  %v2116_v24 = vadd.f32 %v2299_v13, %v2107_v20 }
0x188c   :  { %v2115_v18 = vadd.f32 %v2299_v13, %v2106_v14 }
0x188d   :  { %v2108_v19 = vmul.f32 %v2298_v5, %v2099_v16 }
0x188e   :  { %v2118_v21 = vpack.c.bf16 %v2115_v18, %v2114_v17 }
0x188f   :  { %v2117_v26 = vadd.f32 %v2299_v13, %v2108_v19 }
0x1890   :  { %2556 = vmatprep.mubr.msk.bf16.mxu1 %vm119_vm1, %v2118_v21 }
0x1891   :  { %v2119_v31 = vpack.c.bf16 %v2117_v26, %v2116_v24 }
0x1893   :  { %2557 = vmatmul.mubr.msk.bf16.vlgmr.msra.gmra.mxu1 %vm119_vm1, %v2119_v31 }
0x1953   :  { %v2558_v45 = vpop.f32.mrf.mxu1 }
0x1954   :  { %v2190_v63 = vadd.f32 %v2558_v45, %v2300_v32 }
0x1955   :  { %v2181_v53 = vpop.f32.mrf.mxu1 }
0x1956   :  { %2198 = vst [vmem:[#allocation2 + $0x10] sm:$0xff] %v2190_v63  ;;  %v2182_v12 = vadd.f32 %v2300_v32, %v2181_v53 }
0x1957   :  { %v2559_v35 = vpop.f32.mrf.mxu1 }
0x1958   :  { %2196 = vst [vmem:[#allocation2] sm:$0xff] %v2182_v12  ;;  %v2193_v9 = vadd.f32 %v2559_v35, %v2300_v32 }
0x1959   :  { %v2184_v36 = vpop.f32.mrf.mxu1 }
0x195a   :  { %2199 = vst [vmem:[#allocation2 + $0x18] sm:$0xff] %v2193_v9  ;;  %v2185_v37 = vadd.f32 %v2300_v32, %v2184_v36 }
0x195c   :  { %2197 = vst [vmem:[#allocation2 + $0x8] sm:$0xff] %v2185_v37 }
0x195d   :  { %2771 = shalt.err (!%p2768_p4)
}
0x195e   :  { %s2789_s2 = smov 128   ;;  %s2790_s11 = smov 8  }
0x195f   :  { %2211 = dma.vmem_to_hbm [thread:$0]  %s2206_s9, 512, %s3326_s3, [#allocation3], %s2789_s2, %s2789_s2, %s2790_s11  }
0x1960   :  { %2780 = dma.done.wait [#allocation3], 512  }
0x1961   :  { %2781 = vsyncadd [#allocation3], 4294966784 }
0x1962   :  { %2215 = vsyncpa [#allocation3], 1 }

</bundles_post_ra>
